<compile_context>
chip_gen: v7x
topology: tpu7x:2x2x1
jax: 0.10.0
libtpu: 0.0.40
codegen_flags: <defaults>
</compile_context>

<pallas_src>
import numpy as np
import jax
import jax.numpy as jnp
from jax.experimental import pallas as pl
from jax.experimental.pallas import tpu as pltpu

PERIODS = 3
# rows inside the single 8-row bias tile
_B_EMB, _B_ECB, _B_ELB, _B_PROBS, _B_MLV, _B_DFC, _B_DCB, _B_DLB = range(8)


def _round_up(n, m):
    return ((n + m - 1) // m) * m


# --------------------------------------------------------------------------- host-side, once-per-params packing (numpy)
def _pack_model(params, samples_per_tile):
    f32 = np.float32
    g = lambda k: np.asarray(params[k], f32)
    P = PERIODS
    Fin, H = params["ecw_x"].shape[1], params["ecw_x"].shape[2]
    E = params["ent_w"].shape[0]
    L = params["mu_w"].shape[1]
    N = params["w_score"].shape[0]
    TB = samples_per_tile
    TBN = TB * N                       # rows per grid tile
    ZW = 128                           # 128-lane-aligned z half
    GWP = 2 * ZW                       # fused gate width [z(pad 128) | h(pad 128)]
    assert P * H <= ZW and L <= ZW and 2 * Fin <= 128 and TBN % 8 == 0
    LW = max(GWP, _round_up(TBN, 128))  # slab lane width

    blocks = {}
    # fused entity/time embedding Linear: [ent | tim] -> [ent_h | tim_h]
    emb = np.zeros((2 * E, 2 * H), f32)
    emb[:E, :H] = g("ent_w")
    emb[E:, H:] = g("tim_w")
    blocks["emb"] = emb

    # period-invariant (ent_h|tim_h) term + per-period x term + gate linear,
    # all laid out on 128-lane-aligned z / h halves.
    base_z = np.concatenate([g("ecw_e")[0], g("ecw_t")[0]], axis=0)   # (2H, H)
    base_h = np.concatenate([g("ecw_e")[2], g("ecw_t")[2]], axis=0)
    etc = np.zeros((2 * H, GWP), f32)
    xall = np.zeros((P * Fin, GWP), f32)
    gate = np.zeros((GWP, GWP), f32)
    for p in range(P):
        etc[:, p * H:(p + 1) * H] = base_z
        etc[:, ZW + p * H:ZW + (p + 1) * H] = base_h
        xall[p * Fin:(p + 1) * Fin, p * H:(p + 1) * H] = g("ecw_x")[0]
        xall[p * Fin:(p + 1) * Fin, ZW + p * H:ZW + (p + 1) * H] = g("ecw_x")[2]
        gate[p * H:(p + 1) * H, p * H:(p + 1) * H] = g("elw1")[0]
        gate[ZW + p * H:ZW + (p + 1) * H, ZW + p * H:ZW + (p + 1) * H] = g("elw1")[2]
    blocks["etconv"] = etc
    blocks["xall"] = xall
    blocks["gate"] = gate

    # mu / logvar heads, lane-aligned halves (mu at 0, logvar at 128)
    mlv = np.zeros((H, ZW + L), f32)
    mlv[:, :L] = g("mu_w")
    mlv[:, ZW:ZW + L] = g("lv_w")
    blocks["mlv"] = mlv
    blocks["dfc"] = g("dfc_w")
    blocks["dcw"] = np.concatenate([g("dcw")[0], g("dcw")[2]], axis=1)
    dlw = np.zeros((2 * Fin, 2 * Fin), f32)
    dlw[:Fin, :Fin] = g("dlw1")[0]
    dlw[Fin:, Fin:] = g("dlw1")[2]
    blocks["dlw"] = dlw

    # graph learner + merged-edge GCN sym-normalisation (depends only on params)
    W = 1.0 / (1.0 + np.exp(-np.asarray(params["w_score"], np.float64)))
    A = 1.0 / (1.0 + np.exp(-np.asarray(params["a_score"], np.float64)))
    np.fill_diagonal(W, 0.0)
    Mg = W + A
    dinv = 1.0 / np.sqrt(Mg.sum(axis=0))
    S = (dinv[:, None] * Mg.T) * dinv[None, :]
    # block-diagonal S for one tile of TB stacked samples (same graph for all)
    blocks["sblk"] = np.kron(np.eye(TB), S).astype(f32)

    # all biases + softmaxed attention probs in ONE 8-row tile
    att = np.asarray(params["attention"], np.float64)
    probs = np.exp(att - att.max())
    probs = probs / probs.sum()
    bias = np.zeros((8, LW), f32)
    bias[_B_EMB, :H] = g("ent_b")[0]
    bias[_B_EMB, H:2 * H] = g("tim_b")[0]
    for p in range(P):
        bias[_B_ECB, p * H:(p + 1) * H] = g("ecb")[0, 0]
        bias[_B_ECB, ZW + p * H:ZW + (p + 1) * H] = g("ecb")[2, 0]
        bias[_B_ELB, p * H:(p + 1) * H] = g("elb")[0, 0]
        bias[_B_ELB, ZW + p * H:ZW + (p + 1) * H] = g("elb")[2, 0]
        bias[_B_PROBS, p * H:(p + 1) * H] = probs[p]
    bias[_B_MLV, :L] = g("mu_b")[0]
    bias[_B_MLV, ZW:ZW + L] = g("lv_b")[0]
    bias[_B_DFC, :H] = g("dfc_b")[0]
    bias[_B_DCB, :Fin] = g("dcb")[0, 0]
    bias[_B_DCB, Fin:2 * Fin] = g("dcb")[2, 0]
    bias[_B_DLB, :Fin] = g("dlb")[0, 0]
    bias[_B_DLB, Fin:2 * Fin] = g("dlb")[2, 0]
    blocks["bias"] = bias

    order = ["emb", "etconv", "xall", "gate", "mlv", "dfc", "dcw", "dlw", "sblk", "bias"]
    offs, off = {}, 0
    for name in order:
        offs[name] = off
        off += _round_up(blocks[name].shape[0], 16)        # bf16 sublane tile = 16 rows
    rows = _round_up(off, 16)
    slab = np.zeros((rows, LW), f32)
    for name in order:
        b = blocks[name]
        slab[offs[name]:offs[name] + b.shape[0], :b.shape[1]] = b

    dims = dict(N=N, P=P, Fin=Fin, E=E, H=H, L=L, ZW=ZW, GWP=GWP, LW=LW,
                TB=TB, TBN=TBN, WROWS=rows)
    return (jnp.asarray(slab, jnp.bfloat16), offs, dims,
            jnp.asarray(W, jnp.float32), jnp.asarray(A, jnp.float32))


# --------------------------------------------------------------------------- kernel factory
def make_causal_graph_vae_forward(params, samples_per_tile=16):
    slab, offs, d, Wg, Ag = _pack_model(params, samples_per_tile)
    N, P, Fin, E, H, L = d["N"], d["P"], d["Fin"], d["E"], d["H"], d["L"]
    ZW, GWP, LW = d["ZW"], d["GWP"], d["LW"]
    TB, TBN, WROWS = d["TB"], d["TBN"], d["WROWS"]
    NODE_USED = P * Fin + 2 * E + L
    NODE_W = _round_up(NODE_USED, 128)
    OUT_USED = Fin + 2 * L
    OUT_W = _round_up(OUT_USED, 128)
    f32, bf16 = jnp.float32, jnp.bfloat16

    def kernel(node_ref, w_ref, out_ref):
        def mm(a, b):                                  # bf16 operands, f32 accumulate
            return jnp.dot(a.astype(bf16), b.astype(bf16), preferred_element_type=f32)

        def wblk(name, r, c):
            o = offs[name]
            return w_ref[o:o + r, 0:c]

        bias = w_ref[offs["bias"]:offs["bias"] + 8, :].astype(f32)   # one tile load

        def brow(i, c):
            return bias[i:i + 1, 0:c]

        node = node_ref[...]                           # (TBN, NODE_W) f32
        x_all = node[:, 0:P * Fin]
        emb_cat = node[:, P * Fin:P * Fin + 2 * E]
        eps_v = node[:, P * Fin + 2 * E:NODE_USED]

        Sb = wblk("sblk", TBN, TBN)                    # block-diag S (per-sample agg)

        # fused entity/time embedding: one matmul -> [ent_h | tim_h]
        et_h = jnp.maximum(mm(emb_cat, wblk("emb", 2 * E, 2 * H)) + brow(_B_EMB, 2 * H), 0.0)

        # A3TGCN encoder: all 3 periods + both live gates (z, h) in 3 wide matmuls
        # (R gate / H0 terms are dead: initial hidden state is 0)
        pre = mm(x_all, wblk("xall", P * Fin, GWP)) + mm(et_h, wblk("etconv", 2 * H, GWP))
        conv = mm(Sb, pre) + brow(_B_ECB, GWP)
        gate = mm(conv, wblk("gate", GWP, GWP)) + brow(_B_ELB, GWP)
        zs = jax.nn.sigmoid(gate[:, 0:ZW])             # whole-lane-tile slices
        hs = jnp.tanh(gate[:, ZW:GWP])
        cells = (1.0 - zs) * hs * brow(_B_PROBS, ZW)   # attention probs folded in
        h_enc = jnp.maximum(cells[:, 0:H] + cells[:, H:2 * H] + cells[:, 2 * H:3 * H], 0.0)

        # mu / logvar heads (lane-aligned halves) + reparameterisation
        mlv = mm(h_enc, wblk("mlv", H, ZW + L)) + brow(_B_MLV, ZW + L)
        mu = mlv[:, 0:L]
        logvar = mlv[:, ZW:ZW + L]
        z = mu + eps_v * jnp.exp(0.5 * logvar)

        # decoder: Linear -> TGCN cell (zero hidden state -> z/h gates only) -> relu
        xd = mm(z, wblk("dfc", L, H)) + brow(_B_DFC, H)
        dconv = mm(Sb, mm(xd, wblk("dcw", H, 2 * Fin))) + brow(_B_DCB, 2 * Fin)
        dgate = mm(dconv, wblk("dlw", 2 * Fin, 2 * Fin)) + brow(_B_DLB, 2 * Fin)
        recon = jnp.maximum(
            (1.0 - jax.nn.sigmoid(dgate[:, 0:Fin])) * jnp.tanh(dgate[:, Fin:2 * Fin]), 0.0)

        # single lane-dense packed output store
        parts = [recon, mu, logvar]
        if OUT_W > OUT_USED:
            parts.append(jnp.zeros((TBN, OUT_W - OUT_USED), f32))
        out_ref[...] = jnp.concatenate(parts, axis=-1)

    @jax.jit
    def forward(x, entity_emb, time_emb, eps):
        single = (x.ndim == 3)
        if single:
            x, entity_emb, time_emb, eps = x[None], entity_emb[None], time_emb[None], eps[None]
        B = x.shape[0]
        assert x.shape[1:] == (P, N, Fin)
        B_pad = _round_up(max(B, 1), TB)
        n_tiles = B_pad // TB

        # per-call node slab: [x_cat (P*Fin) | ent (E) | tim (E) | eps (L)] per node row
        x_cat = jnp.transpose(x, (0, 2, 1, 3)).reshape(B, N, P * Fin)
        node = jnp.concatenate(
            [x_cat.astype(f32), entity_emb.astype(f32), time_emb.astype(f32), eps.astype(f32)],
            axis=-1)
        node = jnp.pad(node, ((0, B_pad - B), (0, 0), (0, NODE_W - NODE_USED)))
        node = node.reshape(B_pad * N, NODE_W)

        out = pl.pallas_call(
            kernel,
            out_shape=jax.ShapeDtypeStruct((B_pad * N, OUT_W), f32),
            grid=(n_tiles,),
            in_specs=[
                pl.BlockSpec((TBN, NODE_W), lambda b: (b, 0)),    # per-tile node rows
                pl.BlockSpec((WROWS, LW), lambda b: (0, 0)),      # weights stay resident
            ],
            out_specs=pl.BlockSpec((TBN, OUT_W), lambda b: (b, 0)),
            compiler_params=pltpu.CompilerParams(
                dimension_semantics=("parallel",)),               # 2 TCs on v7x
        )(node, slab)

        out = out.reshape(B_pad, N, OUT_W)[:B]
        recon = out[..., 0:Fin]
        mu = out[..., Fin:Fin + L]
        logvar = out[..., Fin + L:Fin + 2 * L]
        if single:
            recon, mu, logvar = recon[0], mu[0], logvar[0]
        return recon, mu, logvar, Wg, Ag

    return forward


# --------------------------------------------------------------------------- reference (plain JAX, unfused math, single sample)
def reference_forward(params, x, entity_emb, time_emb, eps):
    hi = jax.lax.Precision.HIGHEST
    mm = lambda a, b: jnp.dot(a, b, precision=hi)
    P, N, Fin = x.shape
    H = params["ent_w"].shape[1]

    W = jnp.clip(jax.nn.sigmoid(params["w_score"]), 0, 1)
    A = jnp.clip(jax.nn.sigmoid(params["a_score"]), 0, 1)
    W = W * (1.0 - jnp.eye(N, dtype=W.dtype))
    M = W + A
    deg = jnp.sum(M, axis=0)
    dinv = 1.0 / jnp.sqrt(deg)
    S = dinv[:, None] * M.T * dinv[None, :]

    ent_h = jax.nn.relu(mm(entity_emb, params["ent_w"]) + params["ent_b"])
    tim_h = jax.nn.relu(mm(time_emb, params["tim_w"]) + params["tim_b"])

    def enc_gcn(g, xp):
        pre = mm(xp, params["ecw_x"][g]) + mm(ent_h, params["ecw_e"][g]) + mm(tim_h, params["ecw_t"][g])
        return mm(S, pre) + params["ecb"][g]

    def enc_cell(xp):
        H0 = jnp.zeros((N, H), jnp.float32)
        Z = jax.nn.sigmoid(mm(enc_gcn(0, xp), params["elw1"][0]) + mm(H0, params["elw2"][0]) + params["elb"][0])
        R = jax.nn.sigmoid(mm(enc_gcn(1, xp), params["elw1"][1]) + mm(H0, params["elw2"][1]) + params["elb"][1])
        Ht = jnp.tanh(mm(enc_gcn(2, xp), params["elw1"][2]) + mm(H0 * R, params["elw2"][2]) + params["elb"][2])
        return Z * H0 + (1 - Z) * Ht

    probs = jax.nn.softmax(params["attention"])
    h = sum(probs[p] * enc_cell(x[p]) for p in range(P))
    h = jax.nn.relu(h)
    mu = mm(h, params["mu_w"]) + params["mu_b"]
    logvar = mm(h, params["lv_w"]) + params["lv_b"]
    z = mu + eps * jnp.exp(0.5 * logvar)
    xd = mm(z, params["dfc_w"]) + params["dfc_b"]

    def dec_gcn(g, xin):
        return mm(S, mm(xin, params["dcw"][g])) + params["dcb"][g]

    H0d = jnp.zeros((N, Fin), jnp.float32)
    Zd = jax.nn.sigmoid(mm(dec_gcn(0, xd), params["dlw1"][0]) + mm(H0d, params["dlw2"][0]) + params["dlb"][0])
    Rd = jax.nn.sigmoid(mm(dec_gcn(1, xd), params["dlw1"][1]) + mm(H0d, params["dlw2"][1]) + params["dlb"][1])
    Htd = jnp.tanh(mm(dec_gcn(2, xd), params["dlw1"][2]) + mm(H0d * Rd, params["dlw2"][2]) + params["dlb"][2])
    recon = jax.nn.relu(Zd * H0d + (1 - Zd) * Htd)
    return recon, mu, logvar, W, A


# --------------------------------------------------------------------------- params
def init_params(key, input_dim, embed_dim, hidden_dim, latent_dim, num_nodes):
    ks = iter(jax.random.split(key, 40))

    def nrm(shape, scale=0.1):
        return (scale * jax.random.normal(next(ks), shape)).astype(jnp.float32)

    p = {}
    p["w_score"] = jax.random.normal(next(ks), (num_nodes, num_nodes), jnp.float32)
    p["a_score"] = jax.random.normal(next(ks), (num_nodes, num_nodes), jnp.float32)
    p["ent_w"] = nrm((embed_dim, hidden_dim)); p["ent_b"] = nrm((1, hidden_dim))
    p["tim_w"] = nrm((embed_dim, hidden_dim)); p["tim_b"] = nrm((1, hidden_dim))
    # A3TGCN base TGCN cell: GCNConv(in=input_dim+2*hidden, out=hidden); leading dim 3 = gates (z,r,h)
    p["ecw_x"] = nrm((PERIODS, input_dim, hidden_dim))
    p["ecw_e"] = nrm((PERIODS, hidden_dim, hidden_dim))
    p["ecw_t"] = nrm((PERIODS, hidden_dim, hidden_dim))
    p["ecb"] = nrm((PERIODS, 1, hidden_dim))
    p["elw1"] = nrm((PERIODS, hidden_dim, hidden_dim))
    p["elw2"] = nrm((PERIODS, hidden_dim, hidden_dim))   # dead (hidden state is 0), kept for reference
    p["elb"] = nrm((PERIODS, 1, hidden_dim))
    p["attention"] = jax.random.uniform(next(ks), (PERIODS,), jnp.float32)
    p["mu_w"] = nrm((hidden_dim, latent_dim)); p["mu_b"] = nrm((1, latent_dim))
    p["lv_w"] = nrm((hidden_dim, latent_dim)); p["lv_b"] = nrm((1, latent_dim))
    p["dfc_w"] = nrm((latent_dim, hidden_dim)); p["dfc_b"] = nrm((1, hidden_dim))
    p["dcw"] = nrm((PERIODS, hidden_dim, input_dim))
    p["dcb"] = nrm((PERIODS, 1, input_dim))
    p["dlw1"] = nrm((PERIODS, input_dim, input_dim))
    p["dlw2"] = nrm((PERIODS, input_dim, input_dim))     # dead (hidden state is 0), kept for reference
    p["dlb"] = nrm((PERIODS, 1, input_dim))
    return p


# --------------------------------------------------------------------------- main
if __name__ == "__main__":
    input_dim, embed_dim, hidden_dim, latent_dim, num_nodes = 4, 8, 32, 16, 8
    batch = 20                               # pads to 32 samples -> grid of 2 batch tiles

    key = jax.random.PRNGKey(0)
    k_param, k_x, k_e, k_t, k_eps = jax.random.split(key, 5)
    params = init_params(k_param, input_dim, embed_dim, hidden_dim, latent_dim, num_nodes)

    x = jax.random.normal(k_x, (batch, PERIODS, num_nodes, input_dim), jnp.float32)
    entity_emb = jax.random.normal(k_e, (batch, num_nodes, embed_dim), jnp.float32)
    time_emb = jax.random.normal(k_t, (batch, num_nodes, embed_dim), jnp.float32)
    eps = jax.random.normal(k_eps, (batch, num_nodes, latent_dim), jnp.float32)   # reparam noise

    fwd = make_causal_graph_vae_forward(params, samples_per_tile=16)
    recon, mu, logvar, W, A = jax.block_until_ready(fwd(x, entity_emb, time_emb, eps))

    assert recon.shape == (batch, num_nodes, input_dim)
    assert mu.shape == (batch, num_nodes, latent_dim) and logvar.shape == mu.shape
    assert W.shape == (num_nodes, num_nodes) and A.shape == (num_nodes, num_nodes)

    ref_fn = jax.jit(jax.vmap(reference_forward, in_axes=(None, 0, 0, 0, 0)))
    r_recon, r_mu, r_logvar, r_W, r_A = ref_fn(params, x, entity_emb, time_emb, eps)

    np.testing.assert_allclose(np.asarray(recon), np.asarray(r_recon), rtol=2e-2, atol=2e-2)
    np.testing.assert_allclose(np.asarray(mu), np.asarray(r_mu), rtol=2e-2, atol=2e-2)
    np.testing.assert_allclose(np.asarray(logvar), np.asarray(r_logvar), rtol=2e-2, atol=2e-2)
    np.testing.assert_allclose(np.asarray(W), np.asarray(r_W[0]), rtol=1e-4, atol=1e-5)
    np.testing.assert_allclose(np.asarray(A), np.asarray(r_A[0]), rtol=1e-4, atol=1e-5)

    print("KERNEL_OK")
</pallas_src>

<mosaic_0001>
module attributes {stable_mosaic.version = 11 : i64} {
  func.func @kernel(%arg0: i32, %arg1: memref<128x128xf32, #tpu.memory_space<vmem>>, %arg2: memref<592x256xbf16, #tpu.memory_space<vmem>>, %arg3: memref<128x128xf32, #tpu.memory_space<vmem>>) attributes {dimension_semantics = [#tpu.dimension_semantics<parallel>], iteration_bounds = array<i64: 2>, scalar_prefetch = 0 : i64, scratch_operands = 0 : i64, tpu.core_type = #tpu.core_type<tc>, window_params = [{transform_indices = @transform_0, window_bounds = array<i64: 128, 128>}, {pipeline_mode = #tpu.pipeline_mode<synchronous>, transform_indices = @transform_1, window_bounds = array<i64: 592, 256>}, {transform_indices = @transform_2, window_bounds = array<i64: 128, 128>}]} {
    %c576 = arith.constant 576 : index
    %c0 = arith.constant 0 : index
    %0 = vector.load %arg2[%c576, %c0] : memref<592x256xbf16, #tpu.memory_space<vmem>>, vector<8x256xbf16>
    %1 = arith.extf %0 : vector<8x256xbf16> to vector<8x256xf32>
    %c0_0 = arith.constant 0 : index
    %c0_1 = arith.constant 0 : index
    %2 = vector.load %arg1[%c0_0, %c0_1] : memref<128x128xf32, #tpu.memory_space<vmem>>, vector<128x128xf32>
    %3 = vector.extract_strided_slice %2 {offsets = [0, 0], sizes = [128, 12], strides = [1, 1]} : vector<128x128xf32> to vector<128x12xf32>
    %4 = vector.extract_strided_slice %2 {offsets = [0, 12], sizes = [128, 16], strides = [1, 1]} : vector<128x128xf32> to vector<128x16xf32>
    %5 = vector.extract_strided_slice %2 {offsets = [0, 28], sizes = [128, 16], strides = [1, 1]} : vector<128x128xf32> to vector<128x16xf32>
    %c448 = arith.constant 448 : index
    %c0_2 = arith.constant 0 : index
    %6 = vector.load %arg2[%c448, %c0_2] : memref<592x256xbf16, #tpu.memory_space<vmem>>, vector<128x128xbf16>
    %c0_3 = arith.constant 0 : index
    %c0_4 = arith.constant 0 : index
    %7 = vector.load %arg2[%c0_3, %c0_4] : memref<592x256xbf16, #tpu.memory_space<vmem>>, vector<16x64xbf16>
    %8 = arith.truncf %4 : vector<128x16xf32> to vector<128x16xbf16>
    %cst = arith.constant dense<0.000000e+00> : vector<128x64xf32>
    %9 = tpu.matmul %8, %7, %cst {dimension_numbers = #tpu.dot_dimension_numbers<[1], [0], [0], [1], [0, 0, 1, 1], [], []>} : vector<128x16xbf16>, vector<16x64xbf16>, vector<128x64xf32> -> vector<128x64xf32>
    %10 = vector.extract_strided_slice %1 {offsets = [0, 0], sizes = [1, 64], strides = [1, 1]} : vector<8x256xf32> to vector<1x64xf32>
    %11 = vector.broadcast %10 : vector<1x64xf32> to vector<128x64xf32>
    %12 = arith.addf %9, %11 : vector<128x64xf32>
    %cst_5 = arith.constant 0.000000e+00 : f32
    %13 = vector.broadcast %cst_5 : f32 to vector<128x64xf32>
    %14 = arith.maximumf %12, %13 : vector<128x64xf32>
    %c80 = arith.constant 80 : index
    %c0_6 = arith.constant 0 : index
    %15 = vector.load %arg2[%c80, %c0_6] : memref<592x256xbf16, #tpu.memory_space<vmem>>, vector<12x256xbf16>
    %16 = arith.truncf %3 : vector<128x12xf32> to vector<128x12xbf16>
    %cst_7 = arith.constant dense<0.000000e+00> : vector<128x256xf32>
    %17 = tpu.matmul %16, %15, %cst_7 {dimension_numbers = #tpu.dot_dimension_numbers<[1], [0], [0], [1], [0, 0, 1, 1], [], []>} : vector<128x12xbf16>, vector<12x256xbf16>, vector<128x256xf32> -> vector<128x256xf32>
    %c16 = arith.constant 16 : index
    %c0_8 = arith.constant 0 : index
    %18 = vector.load %arg2[%c16, %c0_8] : memref<592x256xbf16, #tpu.memory_space<vmem>>, vector<64x256xbf16>
    %19 = arith.truncf %14 : vector<128x64xf32> to vector<128x64xbf16>
    %cst_9 = arith.constant dense<0.000000e+00> : vector<128x256xf32>
    %20 = tpu.matmul %19, %18, %cst_9 {dimension_numbers = #tpu.dot_dimension_numbers<[1], [0], [0], [1], [0, 0, 1, 1], [], []>} : vector<128x64xbf16>, vector<64x256xbf16>, vector<128x256xf32> -> vector<128x256xf32>
    %21 = arith.addf %17, %20 : vector<128x256xf32>
    %22 = arith.truncf %21 : vector<128x256xf32> to vector<128x256xbf16>
    %cst_10 = arith.constant dense<0.000000e+00> : vector<128x256xf32>
    %23 = tpu.matmul %6, %22, %cst_10 {dimension_numbers = #tpu.dot_dimension_numbers<[1], [0], [0], [1], [0, 0, 1, 1], [], []>} : vector<128x128xbf16>, vector<128x256xbf16>, vector<128x256xf32> -> vector<128x256xf32>
    %24 = vector.extract_strided_slice %1 {offsets = [1, 0], sizes = [1, 256], strides = [1, 1]} : vector<8x256xf32> to vector<1x256xf32>
    %25 = vector.broadcast %24 : vector<1x256xf32> to vector<128x256xf32>
    %26 = arith.addf %23, %25 : vector<128x256xf32>
    %c96 = arith.constant 96 : index
    %c0_11 = arith.constant 0 : index
    %27 = vector.load %arg2[%c96, %c0_11] : memref<592x256xbf16, #tpu.memory_space<vmem>>, vector<256x256xbf16>
    %28 = arith.truncf %26 : vector<128x256xf32> to vector<128x256xbf16>
    %cst_12 = arith.constant dense<0.000000e+00> : vector<128x256xf32>
    %29 = tpu.matmul %28, %27, %cst_12 {dimension_numbers = #tpu.dot_dimension_numbers<[1], [0], [0], [1], [0, 0, 1, 1], [], []>} : vector<128x256xbf16>, vector<256x256xbf16>, vector<128x256xf32> -> vector<128x256xf32>
    %30 = vector.extract_strided_slice %1 {offsets = [2, 0], sizes = [1, 256], strides = [1, 1]} : vector<8x256xf32> to vector<1x256xf32>
    %31 = vector.broadcast %30 : vector<1x256xf32> to vector<128x256xf32>
    %32 = arith.addf %29, %31 : vector<128x256xf32>
    %33 = vector.extract_strided_slice %32 {offsets = [0, 0], sizes = [128, 128], strides = [1, 1]} : vector<128x256xf32> to vector<128x128xf32>
    %34 = arith.negf %33 : vector<128x128xf32>
    %35 = math.exp %34 : vector<128x128xf32>
    %cst_13 = arith.constant 1.000000e+00 : f32
    %36 = vector.broadcast %cst_13 : f32 to vector<128x128xf32>
    %37 = arith.addf %36, %35 : vector<128x128xf32>
    %38 = arith.divf %36, %37 : vector<128x128xf32>
    %39 = vector.extract_strided_slice %32 {offsets = [0, 128], sizes = [128, 128], strides = [1, 1]} : vector<128x256xf32> to vector<128x128xf32>
    %40 = math.tanh %39 : vector<128x128xf32>
    %cst_14 = arith.constant 1.000000e+00 : f32
    %41 = vector.broadcast %cst_14 : f32 to vector<128x128xf32>
    %42 = arith.subf %41, %38 : vector<128x128xf32>
    %43 = arith.mulf %42, %40 : vector<128x128xf32>
    %44 = vector.extract_strided_slice %1 {offsets = [3, 0], sizes = [1, 128], strides = [1, 1]} : vector<8x256xf32> to vector<1x128xf32>
    %45 = vector.broadcast %44 : vector<1x128xf32> to vector<128x128xf32>
    %46 = arith.mulf %43, %45 : vector<128x128xf32>
    %47 = vector.extract_strided_slice %46 {offsets = [0, 0], sizes = [128, 32], strides = [1, 1]} : vector<128x128xf32> to vector<128x32xf32>
    %48 = vector.extract_strided_slice %46 {offsets = [0, 32], sizes = [128, 32], strides = [1, 1]} : vector<128x128xf32> to vector<128x32xf32>
    %49 = arith.addf %47, %48 : vector<128x32xf32>
    %50 = vector.extract_strided_slice %46 {offsets = [0, 64], sizes = [128, 32], strides = [1, 1]} : vector<128x128xf32> to vector<128x32xf32>
    %51 = arith.addf %49, %50 : vector<128x32xf32>
    %cst_15 = arith.constant 0.000000e+00 : f32
    %52 = vector.broadcast %cst_15 : f32 to vector<128x32xf32>
    %53 = arith.maximumf %51, %52 : vector<128x32xf32>
    %c352 = arith.constant 352 : index
    %c0_16 = arith.constant 0 : index
    %54 = vector.load %arg2[%c352, %c0_16] : memref<592x256xbf16, #tpu.memory_space<vmem>>, vector<32x144xbf16>
    %55 = arith.truncf %53 : vector<128x32xf32> to vector<128x32xbf16>
    %cst_17 = arith.constant dense<0.000000e+00> : vector<128x144xf32>
    %56 = tpu.matmul %55, %54, %cst_17 {dimension_numbers = #tpu.dot_dimension_numbers<[1], [0], [0], [1], [0, 0, 1, 1], [], []>} : vector<128x32xbf16>, vector<32x144xbf16>, vector<128x144xf32> -> vector<128x144xf32>
    %57 = vector.extract_strided_slice %1 {offsets = [4, 0], sizes = [1, 144], strides = [1, 1]} : vector<8x256xf32> to vector<1x144xf32>
    %58 = vector.broadcast %57 : vector<1x144xf32> to vector<128x144xf32>
    %59 = arith.addf %56, %58 : vector<128x144xf32>
    %60 = vector.extract_strided_slice %59 {offsets = [0, 0], sizes = [128, 16], strides = [1, 1]} : vector<128x144xf32> to vector<128x16xf32>
    %61 = vector.extract_strided_slice %59 {offsets = [0, 128], sizes = [128, 16], strides = [1, 1]} : vector<128x144xf32> to vector<128x16xf32>
    %cst_18 = arith.constant 5.000000e-01 : f32
    %62 = vector.broadcast %cst_18 : f32 to vector<128x16xf32>
    %63 = arith.mulf %62, %61 : vector<128x16xf32>
    %64 = math.exp %63 : vector<128x16xf32>
    %65 = arith.mulf %5, %64 : vector<128x16xf32>
    %66 = arith.addf %60, %65 : vector<128x16xf32>
    %c384 = arith.constant 384 : index
    %c0_19 = arith.constant 0 : index
    %67 = vector.load %arg2[%c384, %c0_19] : memref<592x256xbf16, #tpu.memory_space<vmem>>, vector<16x32xbf16>
    %68 = arith.truncf %66 : vector<128x16xf32> to vector<128x16xbf16>
    %cst_20 = arith.constant dense<0.000000e+00> : vector<128x32xf32>
    %69 = tpu.matmul %68, %67, %cst_20 {dimension_numbers = #tpu.dot_dimension_numbers<[1], [0], [0], [1], [0, 0, 1, 1], [], []>} : vector<128x16xbf16>, vector<16x32xbf16>, vector<128x32xf32> -> vector<128x32xf32>
    %70 = vector.extract_strided_slice %1 {offsets = [5, 0], sizes = [1, 32], strides = [1, 1]} : vector<8x256xf32> to vector<1x32xf32>
    %71 = vector.broadcast %70 : vector<1x32xf32> to vector<128x32xf32>
    %72 = arith.addf %69, %71 : vector<128x32xf32>
    %c400 = arith.constant 400 : index
    %c0_21 = arith.constant 0 : index
    %73 = vector.load %arg2[%c400, %c0_21] : memref<592x256xbf16, #tpu.memory_space<vmem>>, vector<32x8xbf16>
    %74 = arith.truncf %72 : vector<128x32xf32> to vector<128x32xbf16>
    %cst_22 = arith.constant dense<0.000000e+00> : vector<128x8xf32>
    %75 = tpu.matmul %74, %73, %cst_22 {dimension_numbers = #tpu.dot_dimension_numbers<[1], [0], [0], [1], [0, 0, 1, 1], [], []>} : vector<128x32xbf16>, vector<32x8xbf16>, vector<128x8xf32> -> vector<128x8xf32>
    %76 = arith.truncf %75 : vector<128x8xf32> to vector<128x8xbf16>
    %cst_23 = arith.constant dense<0.000000e+00> : vector<128x8xf32>
    %77 = tpu.matmul %6, %76, %cst_23 {dimension_numbers = #tpu.dot_dimension_numbers<[1], [0], [0], [1], [0, 0, 1, 1], [], []>} : vector<128x128xbf16>, vector<128x8xbf16>, vector<128x8xf32> -> vector<128x8xf32>
    %78 = vector.extract_strided_slice %1 {offsets = [6, 0], sizes = [1, 8], strides = [1, 1]} : vector<8x256xf32> to vector<1x8xf32>
    %79 = vector.broadcast %78 : vector<1x8xf32> to vector<128x8xf32>
    %80 = arith.addf %77, %79 : vector<128x8xf32>
    %c432 = arith.constant 432 : index
    %c0_24 = arith.constant 0 : index
    %81 = vector.load %arg2[%c432, %c0_24] : memref<592x256xbf16, #tpu.memory_space<vmem>>, vector<8x8xbf16>
    %82 = arith.truncf %80 : vector<128x8xf32> to vector<128x8xbf16>
    %cst_25 = arith.constant dense<0.000000e+00> : vector<128x8xf32>
    %83 = tpu.matmul %82, %81, %cst_25 {dimension_numbers = #tpu.dot_dimension_numbers<[1], [0], [0], [1], [0, 0, 1, 1], [], []>} : vector<128x8xbf16>, vector<8x8xbf16>, vector<128x8xf32> -> vector<128x8xf32>
    %84 = vector.extract_strided_slice %1 {offsets = [7, 0], sizes = [1, 8], strides = [1, 1]} : vector<8x256xf32> to vector<1x8xf32>
    %85 = vector.broadcast %84 : vector<1x8xf32> to vector<128x8xf32>
    %86 = arith.addf %83, %85 : vector<128x8xf32>
    %87 = vector.extract_strided_slice %86 {offsets = [0, 0], sizes = [128, 4], strides = [1, 1]} : vector<128x8xf32> to vector<128x4xf32>
    %88 = arith.negf %87 : vector<128x4xf32>
    %89 = math.exp %88 : vector<128x4xf32>
    %cst_26 = arith.constant 1.000000e+00 : f32
    %90 = vector.broadcast %cst_26 : f32 to vector<128x4xf32>
    %91 = arith.addf %90, %89 : vector<128x4xf32>
    %92 = arith.divf %90, %91 : vector<128x4xf32>
    %cst_27 = arith.constant 1.000000e+00 : f32
    %93 = vector.broadcast %cst_27 : f32 to vector<128x4xf32>
    %94 = arith.subf %93, %92 : vector<128x4xf32>
    %95 = vector.extract_strided_slice %86 {offsets = [0, 4], sizes = [128, 4], strides = [1, 1]} : vector<128x8xf32> to vector<128x4xf32>
    %96 = math.tanh %95 : vector<128x4xf32>
    %97 = arith.mulf %94, %96 : vector<128x4xf32>
    %cst_28 = arith.constant 0.000000e+00 : f32
    %98 = vector.broadcast %cst_28 : f32 to vector<128x4xf32>
    %99 = arith.maximumf %97, %98 : vector<128x4xf32>
    %cst_29 = arith.constant 0.000000e+00 : f32
    %100 = vector.broadcast %cst_29 : f32 to vector<128x92xf32>
    %101 = tpu.concatenate %99, %60, %61, %100 in 1 : vector<128x4xf32>, vector<128x16xf32>, vector<128x16xf32>, vector<128x92xf32> -> vector<128x128xf32>
    %c0_30 = arith.constant 0 : index
    %c0_31 = arith.constant 0 : index
    %102 = vector.load %arg3[%c0_30, %c0_31] : memref<128x128xf32, #tpu.memory_space<vmem>>, vector<128x128xf32>
    tpu.vector_store %arg3[%c0_30, %c0_31], %101 {strides = array<i32>} : memref<128x128xf32, #tpu.memory_space<vmem>>, vector<128x128xf32>,
    return
  }
  func.func @transform_0(%arg0: i32) -> (i32, i32) {
    %c0_i32 = arith.constant 0 : i32
    %c0_i32_0 = arith.constant 0 : i32
    return %arg0, %c0_i32 : i32, i32
  }
  func.func @transform_1(%arg0: i32) -> (i32, i32) {
    %c0_i32 = arith.constant 0 : i32
    %c0_i32_0 = arith.constant 0 : i32
    %c0_i32_1 = arith.constant 0 : i32
    return %c0_i32, %c0_i32_0 : i32, i32
  }
  func.func @transform_2(%arg0: i32) -> (i32, i32) {
    %c0_i32 = arith.constant 0 : i32
    %c0_i32_0 = arith.constant 0 : i32
    return %arg0, %c0_i32 : i32, i32
  }
}

</mosaic_0001>

<bundles_post_ra>
// kernel: forward.1
= control target key start
LH: loop header
LB: loop body
LE: loop exit
PB: predicated region body
PF: predicated region fallthrough
CT: control target
= control target key end

     0   :  { %s3707_s9 = smov 0   ;;  %s4865_s0 = inlined_call_operand.vmem [shape: f32[256,128], index: 0, kind: input, shape index: {}]   ;;  %s4866_s1 = inlined_call_operand.vmem [shape: bf16[592,256], index: 1, kind: input, shape index: {}]   ;;  %s4867_s2 = inlined_call_operand.vmem [shape: f32[256,128], index: 2, kind: output, shape index: {}]  }
   0x1 LB: > { %s2947_s10 = sadd.s32 4294967295, %s3681_s9   ;;  %p2951_p0 = scmp.ge.s32.totalorder %s3681_s9, 1  ;;  %s3681_s9 = sphi %s3707_s9, %s12_s9  }
   0x2   : > { %p113_p1 = scmp.lt.s32.totalorder %s3681_s9, 3 }
   0x4   : > { %p114_p2 = pnand %p2951_p0, %p113_p1 }
   0x5   : > { %s2952_s11 = sshll.u32 (!%p114_p2), %s2947_s10, 4  ;;  %v3346_v0 = vld [vmem:[%s4866_s1] ss:$8 sps:$4 sm:$0xff] (!%p114_p2)   ;;  %s3683_s18 = smov (!%p114_p2), 116   ;;  %v3347_v25 = vld [vmem:[%s4866_s1 + $0x14] ss:$8 sps:$4 sm:$0xff] (!%p114_p2)   ;;  %v193_v43 = vlaneseq (!%p114_p2) }
   0x6   : > { %117 = sbr.rel (%p114_p2) target bundleno = 2866 (0xb32), region = 28  ;;  %p136_p3 = scmp.lt.s32.totalorder (!%p114_p2), %s2952_s11, 31  ;;  %3158 = vmatprep.subr.bf16.mxu0 (!%p114_p2), %v3346_v0  ;;  %v3349_v26 = vld [vmem:[%s4866_s1 + $0x10] ss:$8 sps:$4 sm:$0xff] (!%p114_p2)   ;;  %v3350_v27 = vld [vmem:[%s4866_s1 + $0x24] ss:$8 sps:$4 sm:$0xff] (!%p114_p2)   ;;  %448 = vmatprep.subr.bf16.mxu1 (!%p114_p2), %v3347_v25 }
   0x7   : > { %3159 = vmatpush3.bf16.msra.mxu0 (!%p114_p2), %v3346_v0  ;;  %v3352_v28 = vld [vmem:[%s4866_s1 + $0x20] ss:$8 sps:$4 sm:$0xff] (!%p114_p2)   ;;  %449 = vmatpush1.bf16.msra.mxu1 (!%p114_p2), %v3349_v26  ;;  %vm227_vm0 = vcmask (!%p114_p2), 130048   ;;  %v3353_v37 = vld [vmem:[%s4866_s1 + $0x34] ss:$8 sps:$4 sm:$0xff] (!%p114_p2)   ;;  %v3684_v41 = vmov (!%p114_p2), 0  }
   0x8   : > { %450 = vmatprep.subr.bf16.mxu1 (!%p114_p2), %v3350_v27  ;;  %v3355_v38 = vld [vmem:[%s4866_s1 + $0x30] ss:$8 sps:$4 sm:$0xff] (!%p114_p2)   ;;  %v3356_v39 = vld [vmem:[%s4866_s1 + $0x44] ss:$8 sps:$4 sm:$0xff] (!%p114_p2)   ;;  %v3358_v40 = vld [vmem:[%s4866_s1 + $0x40] ss:$8 sps:$4 sm:$0xff] (!%p114_p2)   ;;  %480 = vmatprep.mubr.bf16.mxu1 (!%p114_p2), %v3684_v41 }
   0x9   : > { %v3359_v42 = vld [vmem:[%s4866_s1 + $0x54] ss:$8 sps:$4 sm:$0x3f] (!%p114_p2)   ;;  %vm594_vm1 = vcmask (!%p114_p2), 1045504   ;;  %v3806_v44 = vshrl.u32 (!%p114_p2), %v193_v43, 7  ;;  %v3811_v45 = vld [vmem:[%s4866_s1 + $0x240] sm:$0xff] (!%p114_p2) }
   0xa   : > { %v3814_v46 = vunpack.c.l.bf16 (!%p114_p2), %v3811_v45  ;;  %v3361_v57 = vld [vmem:[%s4866_s1 + $0x50] ss:$8 sps:$4 sm:$0x3f] (!%p114_p2)   ;;  %vm423_vm2 = vcmask (!%p114_p2), 523264   ;;  %vm569_vm3 = vcmask (!%p114_p2), 97280   ;;  %s3685_s5 = smov (!%p114_p2), 96  }
   0xb   : > { %451 = vmatpush1.bf16.msra.mxu1 (!%p114_p2), %v3352_v28  ;;  %v195_v47 = vsub.s32 (!%p114_p2), 0, %v3806_v44  ;;  %s3686_s6 = smov (!%p114_p2), 64   ;;  %vm1592_vm4 = vcmask (!%p114_p2), 261120   ;;  %s3687_s10 = smov (!%p114_p2), 28   ;;  %vm2371_vm5 = vcmask (!%p114_p2), 1043456   ;;  %vm2346_vm6 = vcmask (!%p114_p2), 64512  }
   0xc   : > { %452 = vmatprep.subr.bf16.mxu1 (!%p114_p2), %v3353_v37  ;;  %s3688_s15 = smov (!%p114_p2), 100   ;;  %s3689_s16 = smov (!%p114_p2), 4   ;;  %vm2824_vm7 = vcmask (!%p114_p2), 31744   ;;  %vm2841_vm8 = vcmask (!%p114_p2), 162816   ;;  %vm2858_vm9 = vcmask (!%p114_p2), 293888  }
   0xd   : > { %s4869_s11 = smov (!%p136_p3, %s2952_s11), 31  ;;  %v196_v48 = vrot.slane %v3814_v46, %v195_v47  ;;  %s3691_s12 = smov 124  }
   0xe   : > { %s2953_s14 = sshll.u32 %s4869_s11, 3 }
   0xf   : > { %s3726_s17 = scalar_lea.vmem %s4865_s0, %s2953_s14  ;;  %453 = vmatpush1.bf16.msra.mxu1 %v3355_v38 }
  0x10   : > { %v151_v1 = vld [vmem:[%s3726_s17] sm:$0xff]  ;;  %v152_v2 = vld [vmem:[%s3726_s17 + $0x8] sm:$0xff]  ;;  %v153_v3 = vld [vmem:[%s3726_s17 + $0x10] sm:$0xff]  ;;  %454 = vmatprep.subr.bf16.mxu1 %v3356_v39 }
  0x11   : > { %v3731_v4 = vpack.c.bf16 %v152_v2, %v151_v1  ;;  %v154_v5 = vld [vmem:[%s3726_s17 + $0x18] sm:$0xff]  ;;  %v155_v6 = vld [vmem:[%s3726_s17 + $0x20] sm:$0xff]  ;;  %v156_v7 = vld [vmem:[%s3726_s17 + $0x28] sm:$0xff]  ;;  %v596_v1 = vsel %vm594_vm1, %v3361_v57, 0 }
  0x12   : > { %v3736_v8 = vpack.c.bf16 %v156_v7, %v155_v6  ;;  %v157_v9 = vld [vmem:[%s3726_s17 + $0x30] sm:$0xff]  ;;  %v158_v10 = vld [vmem:[%s3726_s17 + $0x38] sm:$0xff]  ;;  %v3741_v11 = vpack.c.bf16 %v154_v5, %v153_v3  ;;  %v159_v13 = vld [vmem:[%s3726_s17 + $0x40] sm:$0xff] }
  0x13   : > { %205 = vrot.lane.b32.xlu0 %v3731_v4, %s3683_s18  ;;  %v3744_v12 = vpack.c.bf16 %v158_v10, %v157_v9  ;;  %v160_v14 = vld [vmem:[%s3726_s17 + $0x48] sm:$0xff]  ;;  %v161_v15 = vld [vmem:[%s3726_s17 + $0x50] sm:$0xff]  ;;  %v162_v16 = vld [vmem:[%s3726_s17 + $0x58] sm:$0xff]  ;;  %455 = vmatpush1.bf16.msra.mxu1 %v3358_v40 }
  0x14   : > { %209 = vrot.lane.b32.xlu1 %v3736_v8, %s3683_s18  ;;  %v163_v17 = vld [vmem:[%s3726_s17 + $0x60] sm:$0xff]  ;;  %v164_v18 = vld [vmem:[%s3726_s17 + $0x68] sm:$0xff]  ;;  %v3753_v19 = vpack.c.bf16 %v160_v14, %v159_v13  ;;  %v165_v20 = vld [vmem:[%s3726_s17 + $0x70] sm:$0xff]  ;;  %v3758_v22 = vpack.c.bf16 %v162_v16, %v161_v15  ;;  %2983 = vmatprep.subr.msk.bf16.mxu1 %vm594_vm1, %v3359_v42 }
  0x15   : > { %v166_v21 = vld [vmem:[%s3726_s17 + $0x78] sm:$0xff]  ;;  %v3761_v23 = vpack.c.bf16 %v164_v18, %v163_v17  ;;  %v3886_v57 = vld [vmem:[%s4866_s1 + $0x80] ss:$8 sps:$4 sm:$0xff]  }
  0x16   : > { %v3764_v24 = vpack.c.bf16 %v166_v21, %v165_v20 }
  0x17   : > { %207 = vrot.lane.b32.xlu0 %v3741_v11, %s3683_s18 }
  0x18   : > { %211 = vrot.lane.b32.xlu1 %v3744_v12, %s3683_s18 }
  0x1b   : > { %213 = vrot.lane.b32.xlu0 %v3753_v19, %s3683_s18 }
  0x1c   : > { %215 = vrot.lane.b32.xlu1 %v3758_v22, %s3683_s18 }
  0x1f   : > { %217 = vrot.lane.b32.xlu0 %v3761_v23, %s3683_s18 }
  0x20   : > { %219 = vrot.lane.b32.xlu1 %v3764_v24, %s3683_s18 }
  0x85   : > { %v206_v29 = vpop.permute.xlu0 %205 }
  0x86   : > { %3160 = vmatprep.mubr.msk.bf16.mxu0 %vm227_vm0, %v206_v29  ;;  %v210_v31 = vpop.permute.xlu1 %209 }
  0x89   : > { %v208_v30 = vpop.permute.xlu0 %207 }
  0x8a   : > { %3161 = vmatmul.mubr.msk.bf16.vlgmr.msra.gmra.mrb[0].mxu0 %vm227_vm0, %v208_v30  ;;  %v212_v32 = vpop.permute.xlu1 %211 }
  0x8b   : > { %3164 = vmatprep.mubr.msk.bf16.mxu0 %vm227_vm0, %v210_v31 }
  0x8d   : > { %v214_v33 = vpop.permute.xlu0 %213 }
  0x8e   : > { %v216_v34 = vpop.permute.xlu1 %215 }
  0x91   : > { %v218_v35 = vpop.permute.xlu0 %217 }
  0x92   : > { %3165 = vmatmul.mubr.msk.bf16.gmra.mrb[4].mxu0 %vm227_vm0, %v212_v32  ;;  %v220_v36 = vpop.permute.xlu1 %219 }
  0x93   : > { %3168 = vmatprep.mubr.msk.bf16.mxu0 %vm227_vm0, %v214_v33 }
  0x9a   : > { %3169 = vmatmul.mubr.msk.bf16.gmra.mrb[8].mxu0 %vm227_vm0, %v216_v34 }
  0x9b   : > { %3172 = vmatprep.mubr.msk.bf16.mxu0 %vm227_vm0, %v218_v35 }
  0xa2   : > { %3173 = vmatmul.mubr.msk.bf16.gmra.mrb[12].mxu0 %vm227_vm0, %v220_v36 }
  0xa3   : > { %818 = vmatprep.mubr.bf16.mxu0 %v3684_v41 }
 0x15d   : > { %v3162_v49 = vpop.f32.mrb[0].mxu0 }
 0x15e   : > { %v295_v50 = vadd.f32 %v3162_v49, %v196_v48  ;;  %v286_v51 = vpop.f32.mrb[1].mxu0 }
 0x15f   : > { %v287_v52 = vadd.f32 %v286_v51, %v196_v48  ;;  %v3163_v53 = vpop.f32.mrb[2].mxu0 }
 0x160   : > { %v298_v54 = vadd.f32 %v3163_v53, %v196_v48  ;;  %v289_v55 = vpop.f32.mrb[3].mxu0  ;;  %v351_v58 = vmax.f32 %v295_v50, 0.0 }
 0x161   : > { %v290_v56 = vadd.f32 %v289_v55, %v196_v48  ;;  %v349_v60 = vmax.f32 %v287_v52, 0.0 }
 0x162   : > { %v352_v59 = vmax.f32 %v298_v54, 0.0 }
 0x163   : > { %v350_v61 = vmax.f32 %v290_v56, 0.0 }
 0x164   : > { %v376_v62 = vpack.c.bf16 %v352_v59, %v351_v58  ;;  %v3891_v59 = vld [vmem:[%s4866_s1 + $0x94] ss:$8 sps:$4 sm:$0xff]  }
 0x165   : > { %v375_v63 = vpack.c.bf16 %v350_v61, %v349_v60  ;;  %v3166_v0 = vpop.f32.mrb[4].mxu0  ;;  %v3898_v60 = vld [vmem:[%s4866_s1 + $0x90] ss:$8 sps:$4 sm:$0xff]  }
 0x166   : > { %v311_v2 = vadd.f32 %v3166_v0, %v196_v48  ;;  %v302_v3 = vpop.f32.mrb[5].mxu0 }
 0x167   : > { %2973 = vmatmul.mubr.msk.bf16.vlgmr.msra.gmra.mrb[0].mxu1 %vm423_vm2, %v375_v63  ;;  %v303_v5 = vadd.f32 %v302_v3, %v196_v48  ;;  %v3167_v6 = vpop.f32.mrb[6].mxu0  ;;  %v3910_v3 = vld [vmem:[%s4866_s1 + $0xa0] ss:$8 sps:$4 sm:$0xff]  }
 0x168   : > { %v355_v7 = vmax.f32 %v311_v2, 0.0  ;;  %v314_v9 = vadd.f32 %v3167_v6, %v196_v48  ;;  %v305_v10 = vpop.f32.mrb[7].mxu0  ;;  %490 = vmatprep.mubr.bf16.mxu1 %v3684_v41  ;;  %602 = vmatpush1.bf16.msra.mxu1 %v596_v1  ;;  %v3915_v6 = vld [vmem:[%s4866_s1 + $0xb4] ss:$8 sps:$4 sm:$0xff]  }
 0x169   : > { %v353_v13 = vmax.f32 %v303_v5, 0.0  ;;  %v306_v14 = vadd.f32 %v305_v10, %v196_v48  ;;  %v3927_v10 = vld [vmem:[%s4866_s1 + $0xc4] ss:$8 sps:$4 sm:$0xff]  }
 0x16a   : > { %v356_v15 = vmax.f32 %v314_v9, 0.0 }
 0x16b   : > { %v354_v16 = vmax.f32 %v306_v14, 0.0 }
 0x16c   : > { %v378_v17 = vpack.c.bf16 %v356_v15, %v355_v7  ;;  %v3922_v7 = vld [vmem:[%s4866_s1 + $0xb0] ss:$8 sps:$4 sm:$0xff]  }
 0x16d   : > { %v377_v18 = vpack.c.bf16 %v354_v16, %v353_v13  ;;  %v3170_v20 = vpop.f32.mrb[8].mxu0 }
 0x16e   : > { %v327_v21 = vadd.f32 %v3170_v20, %v196_v48  ;;  %v318_v25 = vpop.f32.mrb[9].mxu0  ;;  %v3939_v20 = vld [vmem:[%s4866_s1 + $0xd4] ss:$8 sps:$4 sm:$0xff]  }
 0x16f   : > { %2974 = vmatmul.mubr.msk.bf16.gmra.mrb[4].mxu1 %vm423_vm2, %v376_v62  ;;  %v319_v26 = vadd.f32 %v318_v25, %v196_v48  ;;  %v3171_v27 = vpop.f32.mrb[10].mxu0  ;;  %v3903_v62 = vld [vmem:[%s4866_s1 + $0xa4] ss:$8 sps:$4 sm:$0xff]  }
 0x170   : > { %500 = vmatprep.mubr.bf16.mxu1 %v3684_v41  ;;  %v359_v28 = vmax.f32 %v327_v21, 0.0  ;;  %v330_v29 = vadd.f32 %v3171_v27, %v196_v48  ;;  %v321_v30 = vpop.f32.mrb[11].mxu0  ;;  %v3946_v21 = vld [vmem:[%s4866_s1 + $0xd0] ss:$8 sps:$4 sm:$0xff]  }
 0x171   : > { %v357_v31 = vmax.f32 %v319_v26, 0.0  ;;  %v322_v32 = vadd.f32 %v321_v30, %v196_v48  ;;  %v3951_v26 = vld [vmem:[%s4866_s1 + $0xe4] ss:$8 sps:$4 sm:$0xff]  }
 0x172   : > { %v360_v33 = vmax.f32 %v330_v29, 0.0 }
 0x173   : > { %v358_v34 = vmax.f32 %v322_v32, 0.0 }
 0x174   : > { %v380_v35 = vpack.c.bf16 %v360_v33, %v359_v28  ;;  %v3963_v33 = vld [vmem:[%s4866_s1 + $0xf4] ss:$8 sps:$4 sm:$0xff]  }
 0x175   : > { %v379_v36 = vpack.c.bf16 %v358_v34, %v357_v31  ;;  %v3174_v37 = vpop.f32.mrb[12].mxu0  ;;  %v3958_v31 = vld [vmem:[%s4866_s1 + $0xe0] ss:$8 sps:$4 sm:$0xff]   ;;  %v3970_v34 = vld [vmem:[%s4866_s1 + $0xf0] ss:$8 sps:$4 sm:$0xff]  }
 0x176   : > { %v343_v38 = vadd.f32 %v3174_v37, %v196_v48  ;;  %v334_v39 = vpop.f32.mrb[13].mxu0 }
 0x177   : > { %2975 = vmatmul.mubr.msk.bf16.gmra.mrb[8].mxu1 %vm423_vm2, %v377_v18  ;;  %v335_v40 = vadd.f32 %v334_v39, %v196_v48  ;;  %v3175_v42 = vpop.f32.mrb[14].mxu0 }
 0x178   : > { %510 = vmatprep.mubr.bf16.mxu1 %v3684_v41  ;;  %v363_v43 = vmax.f32 %v343_v38, 0.0  ;;  %v346_v47 = vadd.f32 %v3175_v42, %v196_v48  ;;  %v337_v49 = vpop.f32.mrb[15].mxu0  ;;  %v3982_v42 = vld [vmem:[%s4866_s1 + $0x100] ss:$8 sps:$4 sm:$0xff]  }
 0x179   : > { %v361_v50 = vmax.f32 %v335_v40, 0.0  ;;  %v338_v51 = vadd.f32 %v337_v49, %v196_v48  ;;  %v3994_v49 = vld [vmem:[%s4866_s1 + $0x110] ss:$8 sps:$4 sm:$0xff]  }
 0x17a   : > { %v364_v52 = vmax.f32 %v346_v47, 0.0  ;;  %v3987_v47 = vld [vmem:[%s4866_s1 + $0x114] ss:$8 sps:$4 sm:$0xff]  }
 0x17b   : > { %v362_v53 = vmax.f32 %v338_v51, 0.0  ;;  %v3999_v51 = vld [vmem:[%s4866_s1 + $0x124] ss:$8 sps:$4 sm:$0xff]  }
 0x17c   : > { %v382_v54 = vpack.c.bf16 %v364_v52, %v363_v43 }
 0x17d   : > { %v381_v55 = vpack.c.bf16 %v362_v53, %v361_v50 }
 0x17f   : > { %2976 = vmatmul.mubr.msk.bf16.gmra.mrb[12].mxu1 %vm423_vm2, %v378_v17  ;;  %v3934_v17 = vld [vmem:[%s4866_s1 + $0xc0] ss:$8 sps:$4 sm:$0xff]  }
 0x180   : > { %520 = vmatprep.mubr.bf16.mxu1 %v3684_v41 }
 0x187   : > { %2977 = vmatmul.mubr.msk.bf16.gmra.mrb[16].mxu1 %vm423_vm2, %v379_v36  ;;  %v3975_v36 = vld [vmem:[%s4866_s1 + $0x104] ss:$8 sps:$4 sm:$0xff]  }
 0x188   : > { %530 = vmatprep.mubr.bf16.mxu1 %v3684_v41 }
 0x18f   : > { %2978 = vmatmul.mubr.msk.bf16.gmra.mrb[20].mxu1 %vm423_vm2, %v380_v35 }
 0x190   : > { %540 = vmatprep.mubr.bf16.mxu1 %v3684_v41 }
 0x197   : > { %2979 = vmatmul.mubr.msk.bf16.gmra.mrb[24].mxu1 %vm423_vm2, %v381_v55 }
 0x198   : > { %550 = vmatprep.mubr.bf16.mxu1 %v3684_v41 }
 0x19f   : > { %2980 = vmatmul.mubr.msk.bf16.gmra.mrb[28].mxu1 %vm423_vm2, %v382_v54 }
 0x1a0   : > { %633 = vmatprep.mubr.bf16.mxu1 %v3684_v41 }
 0x1a7   : > { %2984 = vmatmul.mubr.msk.bf16.vlgmr.msra.gmra.mrb[0].mxu1 %vm569_vm3, %v3731_v4  ;;  %v3856_v4 = vld [vmem:[%s4866_s1 + $0x64] ss:$8 sps:$4 sm:$0xff]  }
 0x1a8   : > { %643 = vmatprep.mubr.bf16.mxu1 %v3684_v41  ;;  %3264 = vmatprep.subr.bf16.mxu1 %v3856_v4 }
 0x1af   : > { %2985 = vmatmul.mubr.msk.bf16.gmra.mrb[4].mxu1 %vm569_vm3, %v3741_v11  ;;  %v3866_v11 = vld [vmem:[%s4866_s1 + $0x74] ss:$8 sps:$4 sm:$0xff]  }
 0x1b0   : > { %653 = vmatprep.mubr.bf16.mxu1 %v3684_v41 }
 0x1b7   : > { %2986 = vmatmul.mubr.msk.bf16.gmra.mrb[8].mxu1 %vm569_vm3, %v3736_v8  ;;  %v3861_v8 = vld [vmem:[%s4866_s1 + $0x60] ss:$8 sps:$4 sm:$0xff]  }
 0x1b8   : > { %663 = vmatprep.mubr.bf16.mxu1 %v3684_v41  ;;  %3280 = vmatpush1.bf16.msra.mxu1 %v3861_v8 }
 0x1b9   : > { %3265 = vmatprep.subr.bf16.mxu1 %v3866_v11 }
 0x1bf   : > { %2987 = vmatmul.mubr.msk.bf16.gmra.mrb[12].mxu1 %vm569_vm3, %v3744_v12  ;;  %v3874_v12 = vld [vmem:[%s4866_s1 + $0x70] ss:$8 sps:$4 sm:$0xff]  }
 0x1c0   : > { %673 = vmatprep.mubr.bf16.mxu1 %v3684_v41  ;;  %3281 = vmatpush1.bf16.msra.mxu1 %v3874_v12 }
 0x1c7   : > { %2988 = vmatmul.mubr.msk.bf16.gmra.mrb[16].mxu1 %vm569_vm3, %v3753_v19 }
 0x1c8   : > { %683 = vmatprep.mubr.bf16.mxu1 %v3684_v41 }
 0x1cf   : > { %2989 = vmatmul.mubr.msk.bf16.gmra.mrb[20].mxu1 %vm569_vm3, %v3758_v22  ;;  %v3879_v22 = vld [vmem:[%s4866_s1 + $0x84] ss:$8 sps:$4 sm:$0xff]  }
 0x1d0   : > { %693 = vmatprep.mubr.bf16.mxu1 %v3684_v41  ;;  %3266 = vmatprep.subr.bf16.mxu1 %v3879_v22 }
 0x1d1   : > { %3282 = vmatpush1.bf16.msra.mxu1 %v3886_v57 }
 0x1d2   : > { %3267 = vmatprep.subr.bf16.mxu1 %v3891_v59 }
 0x1d5   : > { %3283 = vmatpush1.bf16.msra.mxu1 %v3898_v60 }
 0x1d6   : > { %3268 = vmatprep.subr.bf16.mxu1 %v3903_v62 }
 0x1d7   : > { %2990 = vmatmul.mubr.msk.bf16.gmra.mrb[24].mxu1 %vm569_vm3, %v3761_v23 }
 0x1d8   : > { %703 = vmatprep.mubr.bf16.mxu1 %v3684_v41 }
 0x1d9   : > { %3284 = vmatpush1.bf16.msra.mxu1 %v3910_v3 }
 0x1da   : > { %3269 = vmatprep.subr.bf16.mxu1 %v3915_v6 }
 0x1dd   : > { %3285 = vmatpush1.bf16.msra.mxu1 %v3922_v7 }
 0x1de   : > { %3270 = vmatprep.subr.bf16.mxu1 %v3927_v10 }
 0x1df   : > { %2991 = vmatmul.mubr.msk.bf16.gmra.mrb[28].mxu1 %vm569_vm3, %v3764_v24 }
 0x1e1   : > { %3286 = vmatpush1.bf16.msra.mxu1 %v3934_v17 }
 0x1e2   : > { %3271 = vmatprep.subr.bf16.mxu1 %v3939_v20 }
 0x1e5   : > { %3287 = vmatpush1.bf16.msra.mxu1 %v3946_v21 }
 0x1e6   : > { %3272 = vmatprep.subr.bf16.mxu1 %v3951_v26 }
 0x1e9   : > { %3288 = vmatpush1.bf16.msra.mxu1 %v3958_v31 }
 0x1ea   : > { %3273 = vmatprep.subr.bf16.mxu1 %v3963_v33 }
 0x1ed   : > { %3289 = vmatpush1.bf16.msra.mxu1 %v3970_v34 }
 0x1ee   : > { %3274 = vmatprep.subr.bf16.mxu1 %v3975_v36 }
 0x1f1   : > { %3290 = vmatpush1.bf16.msra.mxu1 %v3982_v42 }
 0x1f2   : > { %3275 = vmatprep.subr.bf16.mxu1 %v3987_v47 }
 0x1f5   : > { %3291 = vmatpush1.bf16.msra.mxu1 %v3994_v49 }
 0x1f6   : > { %3276 = vmatprep.subr.bf16.mxu1 %v3999_v51 }
 0x27a   : > { %v635_v19 = vpop.f32.mrb[0].mxu1 }
 0x27b   : > { %v637_v23 = vpop.f32.mrb[1].mxu1 }
 0x27c   : > { %v639_v24 = vpop.f32.mrb[2].mxu1 }
 0x27d   : > { %v714_v48 = vpack.c.bf16 %v639_v24, %v635_v19  ;;  %v641_v56 = vpop.f32.mrb[3].mxu1  ;;  %v4006_v19 = vld [vmem:[%s4866_s1 + $0x120] ss:$8 sps:$4 sm:$0xff]   ;;  %v4011_v24 = vld [vmem:[%s4866_s1 + $0x134] ss:$8 sps:$4 sm:$0xff]  }
 0x27e   : > { %v715_v58 = vpack.c.bf16 %v641_v56, %v637_v23  ;;  %3292 = vmatpush1.bf16.msra.mxu1 %v4006_v19 }
 0x27f   : > { %3277 = vmatprep.subr.bf16.mxu1 %v4011_v24 }
 0x280   : > { %786 = vmatprep.subr.bf16.mxu0 %v715_v58 }
 0x281   : > { %787 = vmatpush1.bf16.msra.mxu0 %v714_v48  ;;  %v4018_v48 = vld [vmem:[%s4866_s1 + $0x130] ss:$8 sps:$4 sm:$0xff]  }
 0x282   : > { %v645_v61 = vpop.f32.mrb[4].mxu1  ;;  %3293 = vmatpush1.bf16.msra.mxu1 %v4018_v48 }
 0x283   : > { %v647_v63 = vpop.f32.mrb[5].mxu1 }
 0x284   : > { %v649_v0 = vpop.f32.mrb[6].mxu1 }
 0x285   : > { %v716_v1 = vpack.c.bf16 %v649_v0, %v645_v61  ;;  %v651_v2 = vpop.f32.mrb[7].mxu1 }
 0x286   : > { %v717_v5 = vpack.c.bf16 %v651_v2, %v647_v63 }
 0x288   : > { %788 = vmatprep.subr.bf16.mxu0 %v717_v5 }
 0x289   : > { %789 = vmatpush1.bf16.msra.mxu0 %v716_v1 }
 0x28a   : > { %v655_v9 = vpop.f32.mrb[8].mxu1 }
 0x28b   : > { %v657_v13 = vpop.f32.mrb[9].mxu1 }
 0x28c   : > { %v659_v14 = vpop.f32.mrb[10].mxu1 }
 0x28d   : > { %v718_v15 = vpack.c.bf16 %v659_v14, %v655_v9  ;;  %v661_v16 = vpop.f32.mrb[11].mxu1 }
 0x28e   : > { %v719_v18 = vpack.c.bf16 %v661_v16, %v657_v13  ;;  %v3362_v16 = vld [vmem:[%s4866_s1 + $0x1c0] ss:$8 sps:$4 sm:$0xff]  }
 0x290   : > { %790 = vmatprep.subr.bf16.mxu0 %v719_v18  ;;  %v3363_v18 = vld [vmem:[%s4866_s1 + $0x1d0] ss:$8 sps:$4 sm:$0xff]  }
 0x291   : > { %791 = vmatpush1.bf16.msra.mxu0 %v718_v15 }
 0x292   : > { %v665_v25 = vpop.f32.mrb[12].mxu1 }
 0x293   : > { %v667_v27 = vpop.f32.mrb[13].mxu1 }
 0x294   : > { %v669_v28 = vpop.f32.mrb[14].mxu1 }
 0x295   : > { %v720_v29 = vpack.c.bf16 %v669_v28, %v665_v25  ;;  %v671_v30 = vpop.f32.mrb[15].mxu1 }
 0x296   : > { %v721_v32 = vpack.c.bf16 %v671_v30, %v667_v27 }
 0x298   : > { %792 = vmatprep.subr.bf16.mxu0 %v721_v32 }
 0x299   : > { %793 = vmatpush1.bf16.msra.mxu0 %v720_v29 }
 0x29a   : > { %v675_v35 = vpop.f32.mrb[16].mxu1 }
 0x29b   : > { %v677_v37 = vpop.f32.mrb[17].mxu1 }
 0x29c   : > { %v679_v38 = vpop.f32.mrb[18].mxu1 }
 0x29d   : > { %v722_v39 = vpack.c.bf16 %v679_v38, %v675_v35  ;;  %v681_v40 = vpop.f32.mrb[19].mxu1 }
 0x29e   : > { %v723_v43 = vpack.c.bf16 %v681_v40, %v677_v37 }
 0x2a0   : > { %794 = vmatprep.subr.bf16.mxu0 %v723_v43 }
 0x2a1   : > { %795 = vmatpush1.bf16.msra.mxu0 %v722_v39 }
 0x2a2   : > { %v685_v50 = vpop.f32.mrb[20].mxu1 }
 0x2a3   : > { %v687_v52 = vpop.f32.mrb[21].mxu1 }
 0x2a4   : > { %v689_v53 = vpop.f32.mrb[22].mxu1 }
 0x2a5   : > { %v724_v54 = vpack.c.bf16 %v689_v53, %v685_v50  ;;  %v691_v55 = vpop.f32.mrb[23].mxu1 }
 0x2a6   : > { %v725_v23 = vpack.c.bf16 %v691_v55, %v687_v52 }
 0x2a8   : > { %796 = vmatprep.subr.bf16.mxu0 %v725_v23 }
 0x2a9   : > { %797 = vmatpush1.bf16.msra.mxu0 %v724_v54 }
 0x2aa   : > { %v695_v56 = vpop.f32.mrb[24].mxu1 }
 0x2ab   : > { %v697_v58 = vpop.f32.mrb[25].mxu1 }
 0x2ac   : > { %v699_v61 = vpop.f32.mrb[26].mxu1 }
 0x2ad   : > { %v726_v63 = vpack.c.bf16 %v699_v61, %v695_v56  ;;  %v701_v0 = vpop.f32.mrb[27].mxu1 }
 0x2ae   : > { %v727_v1 = vpack.c.bf16 %v701_v0, %v697_v58 }
 0x2b0   : > { %798 = vmatprep.subr.bf16.mxu0 %v727_v1 }
 0x2b1   : > { %799 = vmatpush1.bf16.msra.mxu0 %v726_v63 }
 0x2b2   : > { %v705_v2 = vpop.f32.mrb[28].mxu1 }
 0x2b3   : > { %v707_v5 = vpop.f32.mrb[29].mxu1 }
 0x2b4   : > { %v709_v9 = vpop.f32.mrb[30].mxu1 }
 0x2b5   : > { %v728_v13 = vpack.c.bf16 %v709_v9, %v705_v2  ;;  %v711_v14 = vpop.f32.mrb[31].mxu1 }
 0x2b6   : > { %v729_v15 = vpack.c.bf16 %v711_v14, %v707_v5 }
 0x2b8   : > { %800 = vmatprep.subr.bf16.mxu0 %v729_v15 }
 0x2b9   : > { %801 = vmatpush1.bf16.msra.mxu0 %v728_v13 }
 0x2ba   : > { %1115 = vmatprep.subr.bf16.mxu0 %v3856_v4  ;;  %v3364_v4 = vld [vmem:[%s4866_s1 + $0x1e0] ss:$8 sps:$4 sm:$0xff]  }
 0x2bc   : > { %819 = vmatmul.mubr.bf16.vlgmr.msra.gmra.mrb[16].mxu0 %v3362_v16 }
 0x2bd   : > { %828 = vmatprep.mubr.bf16.mxu0 %v3684_v41  ;;  %1116 = vmatpush1.bf16.msra.mxu0 %v3861_v8  ;;  %v3365_v8 = vld [vmem:[%s4866_s1 + $0x1f0] ss:$8 sps:$4 sm:$0xff]  }
 0x2be   : > { %1117 = vmatprep.subr.bf16.mxu0 %v3866_v11  ;;  %v3366_v11 = vld [vmem:[%s4866_s1 + $0x200] ss:$8 sps:$4 sm:$0xff]  }
 0x2c1   : > { %1118 = vmatpush1.bf16.msra.mxu0 %v3874_v12  ;;  %v3367_v12 = vld [vmem:[%s4866_s1 + $0x210] ss:$8 sps:$4 sm:$0xff]  }
 0x2c2   : > { %1119 = vmatprep.subr.bf16.mxu0 %v3879_v22  ;;  %v3368_v22 = vld [vmem:[%s4866_s1 + $0x220] ss:$8 sps:$4 sm:$0xff]  }
 0x2c4   : > { %829 = vmatmul.mubr.bf16.gmra.mrb[20].mxu0 %v3363_v18 }
 0x2c5   : > { %838 = vmatprep.mubr.bf16.mxu0 %v3684_v41  ;;  %1120 = vmatpush1.bf16.msra.mxu0 %v3886_v57  ;;  %v3369_v57 = vld [vmem:[%s4866_s1 + $0x230] ss:$8 sps:$4 sm:$0xff]  }
 0x2c6   : > { %1121 = vmatprep.subr.bf16.mxu0 %v3891_v59  ;;  %v3414_v59 = vld [vmem:[%s4866_s1 + $0x144] ss:$8 sps:$4 sm:$0xff]  }
 0x2c7   : > { %3278 = vmatprep.subr.bf16.mxu1 %v3414_v59 }
 0x2c9   : > { %1122 = vmatpush1.bf16.msra.mxu0 %v3898_v60  ;;  %v3412_v60 = vld [vmem:[%s4866_s1 + $0x140] ss:$8 sps:$4 sm:$0xff]  }
 0x2ca   : > { %1123 = vmatprep.subr.bf16.mxu0 %v3903_v62  ;;  %3294 = vmatpush1.bf16.msra.mxu1 %v3412_v60  ;;  %v3417_v62 = vld [vmem:[%s4866_s1 + $0x154] ss:$8 sps:$4 sm:$0xff]  }
 0x2cb   : > { %3279 = vmatprep.subr.bf16.mxu1 %v3417_v62 }
 0x2cc   : > { %839 = vmatmul.mubr.bf16.gmra.mrb[24].mxu0 %v3364_v4 }
 0x2cd   : > { %848 = vmatprep.mubr.bf16.mxu0 %v3684_v41  ;;  %1124 = vmatpush1.bf16.msra.mxu0 %v3910_v3  ;;  %v3415_v3 = vld [vmem:[%s4866_s1 + $0x150] ss:$8 sps:$4 sm:$0xff]  }
 0x2ce   : > { %1125 = vmatprep.subr.bf16.mxu0 %v3915_v6  ;;  %3295 = vmatpush1.bf16.msra.mxu1 %v3415_v3  ;;  %v732_v6 = vsub.s32 1, %v3806_v44 }
 0x2d1   : > { %1126 = vmatpush1.bf16.msra.mxu0 %v3922_v7  ;;  %v4094_v7 = vunpack.c.h.bf16 %v3811_v45 }
 0x2d2   : > { %1127 = vmatprep.subr.bf16.mxu0 %v3927_v10  ;;  %v4097_v10 = vrot.slane %v3814_v46, %v732_v6 }
 0x2d4   : > { %849 = vmatmul.mubr.bf16.gmra.mrb[28].mxu0 %v3365_v8 }
 0x2d5   : > { %858 = vmatprep.mubr.bf16.mxu0 %v3684_v41  ;;  %1128 = vmatpush1.bf16.msra.mxu0 %v3934_v17 }
 0x2d6   : > { %1129 = vmatprep.subr.bf16.mxu0 %v3939_v20  ;;  %v4100_v20 = vrot.slane %v4094_v7, %v732_v6 }
 0x2d9   : > { %1130 = vmatpush1.bf16.msra.mxu0 %v3946_v21 }
 0x2da   : > { %1131 = vmatprep.subr.bf16.mxu0 %v3951_v26 }
 0x2dc   : > { %859 = vmatmul.mubr.bf16.gmra.mrb[32].mxu0 %v3366_v11 }
 0x2dd   : > { %868 = vmatprep.mubr.bf16.mxu0 %v3684_v41  ;;  %1132 = vmatpush1.bf16.msra.mxu0 %v3958_v31 }
 0x2de   : > { %1133 = vmatprep.subr.bf16.mxu0 %v3963_v33 }
 0x2e1   : > { %1134 = vmatpush1.bf16.msra.mxu0 %v3970_v34 }
 0x2e2   : > { %1135 = vmatprep.subr.bf16.mxu0 %v3975_v36 }
 0x2e4   : > { %869 = vmatmul.mubr.bf16.gmra.mrb[36].mxu0 %v3367_v12 }
 0x2e5   : > { %878 = vmatprep.mubr.bf16.mxu0 %v3684_v41  ;;  %1136 = vmatpush1.bf16.msra.mxu0 %v3982_v42 }
 0x2e6   : > { %1137 = vmatprep.subr.bf16.mxu0 %v3987_v47 }
 0x2e9   : > { %1138 = vmatpush1.bf16.msra.mxu0 %v3994_v49 }
 0x2ea   : > { %1139 = vmatprep.subr.bf16.mxu0 %v3999_v51 }
 0x2ec   : > { %879 = vmatmul.mubr.bf16.gmra.mrb[40].mxu0 %v3368_v22 }
 0x2ed   : > { %888 = vmatprep.mubr.bf16.mxu0 %v3684_v41  ;;  %1140 = vmatpush1.bf16.msra.mxu0 %v4006_v19 }
 0x2ee   : > { %1141 = vmatprep.subr.bf16.mxu0 %v4011_v24 }
 0x2f1   : > { %1142 = vmatpush1.bf16.msra.mxu0 %v4018_v48 }
 0x2f2   : > { %1143 = vmatprep.subr.bf16.mxu0 %v3414_v59 }
 0x2f4   : > { %889 = vmatmul.mubr.bf16.gmra.mrb[44].mxu0 %v3369_v57 }
 0x2f5   : > { %1144 = vmatpush1.bf16.msra.mxu0 %v3412_v60 }
 0x2f6   : > { %1145 = vmatprep.subr.bf16.mxu0 %v3417_v62 }
 0x2f9   : > { %1146 = vmatpush1.bf16.msra.mxu0 %v3415_v3 }
 0x38f   : > { %v820_v17 = vpop.f32.mrb[16].mxu0 }
 0x390   : > { %v822_v21 = vpop.f32.mrb[17].mxu0  ;;  %v821_v26 = vadd.f32 %v820_v17, %v4097_v10 }
 0x391   : > { %v824_v25 = vpop.f32.mrb[18].mxu0  ;;  %v823_v29 = vadd.f32 %v822_v21, %v4100_v20 }
 0x392   : > { %v825_v27 = vadd.f32 %v824_v25, %v4097_v10  ;;  %v826_v28 = vpop.f32.mrb[19].mxu0 }
 0x393   : > { %v827_v30 = vadd.f32 %v826_v28, %v4100_v20 }
 0x394   : > { %v931_v45 = vpack.c.bf16 %v825_v27, %v821_v26 }
 0x395   : > { %v932_v31 = vpack.c.bf16 %v827_v30, %v823_v29 }
 0x397   : > { %v830_v32 = vpop.f32.mrb[20].mxu0  ;;  %1147 = vmatprep.mubr.bf16.mxu0 %v932_v31 }
 0x398   : > { %v832_v33 = vpop.f32.mrb[21].mxu0  ;;  %1148 = vmatmul.mubr.bf16.vlgmr.msra.gmra.mrb[48].mxu0 %v931_v45  ;;  %v831_v35 = vadd.f32 %v830_v32, %v4097_v10 }
 0x399   : > { %v834_v34 = vpop.f32.mrb[22].mxu0  ;;  %v833_v38 = vadd.f32 %v832_v33, %v4100_v20 }
 0x39a   : > { %v835_v36 = vadd.f32 %v834_v34, %v4097_v10  ;;  %v836_v37 = vpop.f32.mrb[23].mxu0 }
 0x39b   : > { %v837_v39 = vadd.f32 %v836_v37, %v4100_v20 }
 0x39c   : > { %v933_v40 = vpack.c.bf16 %v835_v36, %v831_v35 }
 0x39d   : > { %v934_v42 = vpack.c.bf16 %v837_v39, %v833_v38 }
 0x39f   : > { %v840_v43 = vpop.f32.mrb[24].mxu0  ;;  %1157 = vmatprep.mubr.bf16.mxu0 %v934_v42 }
 0x3a0   : > { %v842_v47 = vpop.f32.mrb[25].mxu0  ;;  %1158 = vmatmul.mubr.bf16.gmra.mrb[52].mxu0 %v933_v40  ;;  %v841_v50 = vadd.f32 %v840_v43, %v4097_v10 }
 0x3a1   : > { %v844_v49 = vpop.f32.mrb[26].mxu0  ;;  %v843_v53 = vadd.f32 %v842_v47, %v4100_v20 }
 0x3a2   : > { %v845_v51 = vadd.f32 %v844_v49, %v4097_v10  ;;  %v846_v52 = vpop.f32.mrb[27].mxu0  ;;  %v949_v49 = vsub.s32 2, %v3806_v44 }
 0x3a3   : > { %v847_v54 = vadd.f32 %v846_v52, %v4100_v20 }
 0x3a4   : > { %v935_v55 = vpack.c.bf16 %v845_v51, %v841_v50  ;;  %v4137_v50 = vrot.slane %v3814_v46, %v949_v49 }
 0x3a5   : > { %v936_v19 = vpack.c.bf16 %v847_v54, %v843_v53 }
 0x3a7   : > { %v850_v23 = vpop.f32.mrb[28].mxu0  ;;  %1167 = vmatprep.mubr.bf16.mxu0 %v936_v19 }
 0x3a8   : > { %v852_v24 = vpop.f32.mrb[29].mxu0  ;;  %1168 = vmatmul.mubr.bf16.gmra.mrb[56].mxu0 %v935_v55  ;;  %v851_v56 = vadd.f32 %v850_v23, %v4097_v10 }
 0x3a9   : > { %v854_v48 = vpop.f32.mrb[30].mxu0  ;;  %v853_v63 = vadd.f32 %v852_v24, %v4100_v20 }
 0x3aa   : > { %v855_v58 = vadd.f32 %v854_v48, %v4097_v10  ;;  %v856_v61 = vpop.f32.mrb[31].mxu0 }
 0x3ab   : > { %v857_v0 = vadd.f32 %v856_v61, %v4100_v20 }
 0x3ac   : > { %v937_v1 = vpack.c.bf16 %v855_v58, %v851_v56  ;;  %v4143_v58 = vrot.slane %v4094_v7, %v949_v49  ;;  %v3421_v49 = vld [vmem:[%s4866_s1 + $0x170] ss:$8 sps:$4 sm:$0xff]  }
 0x3ad   : > { %v938_v2 = vpack.c.bf16 %v857_v0, %v853_v63 }
 0x3af   : > { %v860_v5 = vpop.f32.mrb[32].mxu0  ;;  %1177 = vmatprep.mubr.bf16.mxu0 %v938_v2 }
 0x3b0   : > { %v862_v9 = vpop.f32.mrb[33].mxu0  ;;  %1178 = vmatmul.mubr.bf16.gmra.mrb[60].mxu0 %v937_v1  ;;  %v861_v14 = vadd.f32 %v860_v5, %v4097_v10 }
 0x3b1   : > { %v864_v13 = vpop.f32.mrb[34].mxu0  ;;  %v863_v18 = vadd.f32 %v862_v9, %v4100_v20 }
 0x3b2   : > { %v865_v15 = vadd.f32 %v864_v13, %v4097_v10  ;;  %v866_v16 = vpop.f32.mrb[35].mxu0 }
 0x3b3   : > { %v867_v4 = vadd.f32 %v866_v16, %v4100_v20 }
 0x3b4   : > { %v939_v8 = vpack.c.bf16 %v865_v15, %v861_v14 }
 0x3b5   : > { %v940_v11 = vpack.c.bf16 %v867_v4, %v863_v18 }
 0x3b7   : > { %v870_v12 = vpop.f32.mrb[36].mxu0  ;;  %1187 = vmatprep.mubr.bf16.mxu0 %v940_v11 }
 0x3b8   : > { %v872_v22 = vpop.f32.mrb[37].mxu0  ;;  %1188 = vmatmul.mubr.bf16.gmra.mrb[64].mxu0 %v939_v8  ;;  %v871_v59 = vadd.f32 %v870_v12, %v4097_v10 }
 0x3b9   : > { %v874_v57 = vpop.f32.mrb[38].mxu0  ;;  %v873_v3 = vadd.f32 %v872_v22, %v4100_v20 }
 0x3ba   : > { %v875_v60 = vadd.f32 %v874_v57, %v4097_v10  ;;  %v876_v62 = vpop.f32.mrb[39].mxu0 }
 0x3bb   : > { %v877_v6 = vadd.f32 %v876_v62, %v4100_v20 }
 0x3bc   : > { %v941_v17 = vpack.c.bf16 %v875_v60, %v871_v59 }
 0x3bd   : > { %v942_v21 = vpack.c.bf16 %v877_v6, %v873_v3 }
 0x3bf   : > { %v880_v25 = vpop.f32.mrb[40].mxu0  ;;  %1197 = vmatprep.mubr.bf16.mxu0 %v942_v21 }
 0x3c0   : > { %v882_v26 = vpop.f32.mrb[41].mxu0  ;;  %1198 = vmatmul.mubr.bf16.gmra.mrb[68].mxu0 %v941_v17  ;;  %v881_v28 = vadd.f32 %v880_v25, %v4097_v10  ;;  %v1374_v25 = vsub.s32 3, %v3806_v44 }
 0x3c1   : > { %v884_v27 = vpop.f32.mrb[42].mxu0  ;;  %v883_v45 = vadd.f32 %v882_v26, %v4100_v20 }
 0x3c2   : > { %v885_v29 = vadd.f32 %v884_v27, %v4097_v10  ;;  %v886_v30 = vpop.f32.mrb[43].mxu0 }
 0x3c3   : > { %v887_v31 = vadd.f32 %v886_v30, %v4100_v20 }
 0x3c4   : > { %v943_v32 = vpack.c.bf16 %v885_v29, %v881_v28  ;;  %v3420_v29 = vld [vmem:[%s4866_s1 + $0x164] ss:$8 sps:$4 sm:$0xff]  }
 0x3c5   : > { %v944_v33 = vpack.c.bf16 %v887_v31, %v883_v45  ;;  %1617 = vmatprep.subr.bf16.mxu1 %v3420_v29 }
 0x3c7   : > { %v890_v34 = vpop.f32.mrb[44].mxu0  ;;  %1207 = vmatprep.mubr.bf16.mxu0 %v944_v33 }
 0x3c8   : > { %v892_v35 = vpop.f32.mrb[45].mxu0  ;;  %1208 = vmatmul.mubr.bf16.gmra.mrb[72].mxu0 %v943_v32  ;;  %v891_v37 = vadd.f32 %v890_v34, %v4097_v10  ;;  %v3418_v32 = vld [vmem:[%s4866_s1 + $0x160] ss:$8 sps:$4 sm:$0xff]  }
 0x3c9   : > { %v894_v36 = vpop.f32.mrb[46].mxu0  ;;  %v893_v40 = vadd.f32 %v892_v35, %v4100_v20 }
 0x3ca   : > { %v895_v38 = vadd.f32 %v894_v36, %v4097_v10  ;;  %v896_v39 = vpop.f32.mrb[47].mxu0 }
 0x3cb   : > { %v897_v42 = vadd.f32 %v896_v39, %v4100_v20  ;;  %v3423_v39 = vld [vmem:[%s4866_s1 + $0x174] ss:$8 sps:$4 sm:$0xff]  }
 0x3cc   : > { %v945_v43 = vpack.c.bf16 %v895_v38, %v891_v37  ;;  %v4164_v37 = vrot.slane %v3814_v46, %v1374_v25 }
 0x3cd   : > { %v946_v47 = vpack.c.bf16 %v897_v42, %v893_v40 }
 0x3cf   : > { %1217 = vmatprep.mubr.bf16.mxu1 %v946_v47 }
 0x3d0   : > { %1218 = vmatmul.mubr.bf16.vlgmr.msra.gmra.mrb[32].mxu1 %v945_v43 }
 0x3d1   : > { %1649 = vmatprep.mubr.bf16.mxu1 %v3684_v41  ;;  %1618 = vmatpush1.bf16.msra.mxu1 %v3418_v32 }
 0x3d2   : > { %1619 = vmatprep.subr.bf16.mxu1 %v3423_v39 }
 0x3d5   : > { %1620 = vmatpush1.bf16.msra.mxu1 %v3421_v49 }
 0x46b   : > { %v1149_v51 = vpop.f32.mrb[48].mxu0 }
 0x46c   : > { %v1150_v52 = vadd.f32 %v1149_v51, %v4137_v50  ;;  %v1151_v10 = vpop.f32.mrb[49].mxu0 }
 0x46d   : > { %v1153_v53 = vpop.f32.mrb[50].mxu0  ;;  %v1152_v5 = vadd.f32 %v1151_v10, %v4143_v58 }
 0x46e   : > { %v3032_v54 = vmul.f32 -1.442695, %v1150_v52  ;;  %v1154_v55 = vadd.f32 %v1153_v53, %v4137_v50  ;;  %v1155_v20 = vpop.f32.mrb[51].mxu0 }
 0x46f   : > { %v1156_v4 = vadd.f32 %v1155_v20, %v4143_v58 }
 0x470   : > { %3427 = vpow2.f32 %v3032_v54  ;;  %v3033_v19 = vmul.f32 -1.442695, %v1154_v55 }
 0x472   : > { %3429 = vpow2.f32 %v3033_v19 }
 0x473   : > { %v1159_v23 = vpop.f32.mrb[52].mxu0 }
 0x474   : > { %v1160_v24 = vadd.f32 %v1159_v23, %v4137_v50  ;;  %v1161_v48 = vpop.f32.mrb[53].mxu0 }
 0x475   : > { %v1163_v56 = vpop.f32.mrb[54].mxu0  ;;  %v1162_v60 = vadd.f32 %v1161_v48, %v4143_v58 }
 0x476   : > { %v3034_v61 = vmul.f32 -1.442695, %v1160_v24  ;;  %v1164_v63 = vadd.f32 %v1163_v56, %v4137_v50  ;;  %v1165_v0 = vpop.f32.mrb[55].mxu0 }
 0x477   : > { %v1166_v27 = vadd.f32 %v1165_v0, %v4143_v58 }
 0x478   : > { %3431 = vpow2.f32 %v3034_v61  ;;  %v3035_v1 = vmul.f32 -1.442695, %v1164_v63 }
 0x47a   : > { %v3428_v2 = vpop.eup %3427  ;;  %3433 = vpow2.f32 %v3035_v1 }
 0x47b   : > { %v1276_v9 = vadd.f32 1.0, %v3428_v2  ;;  %v1169_v13 = vpop.f32.mrb[56].mxu0 }
 0x47c   : > { %v3430_v14 = vpop.eup %3429  ;;  %v1170_v15 = vadd.f32 %v1169_v13, %v4137_v50  ;;  %v1171_v16 = vpop.f32.mrb[57].mxu0 }
 0x47d   : > { %3435 = vrcp.f32 %v1276_v9  ;;  %v1277_v18 = vadd.f32 1.0, %v3430_v14  ;;  %v1173_v8 = vpop.f32.mrb[58].mxu0  ;;  %v1172_v43 = vadd.f32 %v1171_v16, %v4143_v58 }
 0x47e   : > { %3437 = vtanh.f32 %v1152_v5  ;;  %v3036_v11 = vmul.f32 -1.442695, %v1170_v15  ;;  %v1174_v12 = vadd.f32 %v1173_v8, %v4137_v50  ;;  %v1175_v22 = vpop.f32.mrb[59].mxu0 }
 0x47f   : > { %3439 = vrcp.f32 %v1277_v18  ;;  %v1176_v24 = vadd.f32 %v1175_v22, %v4143_v58 }
 0x480   : > { %3441 = vpow2.f32 %v3036_v11  ;;  %v3037_v57 = vmul.f32 -1.442695, %v1174_v12 }
 0x481   : > { %3443 = vtanh.f32 %v1156_v4 }
 0x482   : > { %v3432_v59 = vpop.eup %3431  ;;  %3445 = vpow2.f32 %v3037_v57 }
 0x483   : > { %v1278_v62 = vadd.f32 1.0, %v3432_v59  ;;  %v1179_v3 = vpop.f32.mrb[60].mxu0 }
 0x484   : > { %v3434_v6 = vpop.eup %3433  ;;  %v1180_v17 = vadd.f32 %v1179_v3, %v4137_v50  ;;  %v1181_v21 = vpop.f32.mrb[61].mxu0 }
 0x485   : > { %3447 = vrcp.f32 %v1278_v62  ;;  %v1279_v26 = vadd.f32 1.0, %v3434_v6  ;;  %v1183_v28 = vpop.f32.mrb[62].mxu0  ;;  %v1182_v16 = vadd.f32 %v1181_v21, %v4143_v58 }
 0x486   : > { %3449 = vtanh.f32 %v1162_v60  ;;  %v3038_v30 = vmul.f32 -1.442695, %v1180_v17  ;;  %v1184_v45 = vadd.f32 %v1183_v28, %v4137_v50  ;;  %v4158_v31 = vpop.f32.mrb[63].mxu0 }
 0x487   : > { %v3436_v33 = vpop.eup %3435  ;;  %3451 = vrcp.f32 %v1279_v26  ;;  %v1186_v3 = vadd.f32 %v4158_v31, %v4143_v58 }
 0x488   : > { %v3438_v34 = vpop.eup %3437  ;;  %v1340_v35 = vsub.f32 1.0, %v3436_v33  ;;  %3453 = vpow2.f32 %v3038_v30  ;;  %v3039_v36 = vmul.f32 -1.442695, %v1184_v45 }
 0x489   : > { %v3440_v38 = vpop.eup %3439  ;;  %3455 = vtanh.f32 %v1166_v27 }
 0x48a   : > { %v3442_v40 = vpop.eup %3441  ;;  %v1341_v42 = vsub.f32 1.0, %v3440_v38  ;;  %3457 = vpow2.f32 %v3039_v36  ;;  %v1356_v47 = vmul.f32 %v3438_v34, %v1340_v35 }
 0x48b   : > { %v3444_v51 = vpop.eup %3443  ;;  %v1280_v52 = vadd.f32 1.0, %v3442_v40  ;;  %v1189_v10 = vpop.f32.mrb[64].mxu0 }
 0x48c   : > { %v3446_v53 = vpop.eup %3445  ;;  %v1190_v54 = vadd.f32 %v1189_v10, %v4137_v50  ;;  %v1191_v55 = vpop.f32.mrb[65].mxu0  ;;  %v4175_v20 = vmul.f32 %v4164_v37, %v1356_v47  ;;  %v1357_v19 = vmul.f32 %v3444_v51, %v1341_v42 }
 0x48d   : > { %3459 = vrcp.f32 %v1280_v52  ;;  %v1281_v23 = vadd.f32 1.0, %v3446_v53  ;;  %v1193_v48 = vpop.f32.mrb[66].mxu0  ;;  %v1192_v33 = vadd.f32 %v1191_v55, %v4143_v58 }
 0x48e   : > { %3461 = vtanh.f32 %v1172_v43  ;;  %v3040_v56 = vmul.f32 -1.442695, %v1190_v54  ;;  %v1194_v61 = vadd.f32 %v1193_v48, %v4137_v50  ;;  %v4179_v63 = vpop.f32.mrb[67].mxu0  ;;  %1408 = vrot.lane.b32.xlu0 %v4175_v20, %s3685_s5  ;;  %v4184_v0 = vmul.f32 %v4164_v37, %v1357_v19 }
 0x48f   : > { %v3448_v1 = vpop.eup %3447  ;;  %3463 = vrcp.f32 %v1281_v23  ;;  %v1196_v51 = vadd.f32 %v4179_v63, %v4143_v58 }
 0x490   : > { %v3450_v2 = vpop.eup %3449  ;;  %v1342_v5 = vsub.f32 1.0, %v3448_v1  ;;  %3465 = vpow2.f32 %v3040_v56  ;;  %v3041_v9 = vmul.f32 -1.442695, %v1194_v61  ;;  %1410 = vrot.lane.b32.xlu1 %v4184_v0, %s3685_s5 }
 0x491   : > { %v3452_v13 = vpop.eup %3451  ;;  %3467 = vtanh.f32 %v1176_v24 }
 0x492   : > { %v3454_v14 = vpop.eup %3453  ;;  %v1343_v15 = vsub.f32 1.0, %v3452_v13  ;;  %3469 = vpow2.f32 %v3041_v9  ;;  %1472 = vrot.lane.b32.xlu0 %v4175_v20, %s3686_s6  ;;  %v1358_v18 = vmul.f32 %v3450_v2, %v1342_v5 }
 0x493   : > { %v3456_v4 = vpop.eup %3455  ;;  %v1282_v8 = vadd.f32 1.0, %v3454_v14  ;;  %v1199_v11 = vpop.f32.mrb[68].mxu0 }
 0x494   : > { %v3458_v12 = vpop.eup %3457  ;;  %v1200_v22 = vadd.f32 %v1199_v11, %v4137_v50  ;;  %v1201_v57 = vpop.f32.mrb[69].mxu0  ;;  %1474 = vrot.lane.b32.xlu1 %v4184_v0, %s3686_s6  ;;  %v4195_v59 = vmul.f32 %v4164_v37, %v1358_v18  ;;  %v1359_v60 = vmul.f32 %v3456_v4, %v1343_v15 }
 0x495   : > { %3471 = vrcp.f32 %v1282_v8  ;;  %v1283_v62 = vadd.f32 1.0, %v3458_v12  ;;  %v1203_v6 = vpop.f32.mrb[70].mxu0  ;;  %v1202_v1 = vadd.f32 %v1201_v57, %v4143_v58 }
 0x496   : > { %3473 = vtanh.f32 %v1182_v16  ;;  %v3042_v17 = vmul.f32 -1.442695, %v1200_v22  ;;  %v1204_v21 = vadd.f32 %v1203_v6, %v4137_v50  ;;  %v4200_v25 = vpop.f32.mrb[71].mxu0  ;;  %1412 = vrot.lane.b32.xlu0 %v4195_v59, %s3685_s5  ;;  %v4205_v26 = vmul.f32 %v4164_v37, %v1359_v60 }
 0x497   : > { %v3460_v27 = vpop.eup %3459  ;;  %3475 = vrcp.f32 %v1283_v62  ;;  %v1206_v11 = vadd.f32 %v4200_v25, %v4143_v58 }
 0x498   : > { %v3462_v28 = vpop.eup %3461  ;;  %v1344_v29 = vsub.f32 1.0, %v3460_v27  ;;  %3477 = vpow2.f32 %v3042_v17  ;;  %v3043_v30 = vmul.f32 -1.442695, %v1204_v21  ;;  %1414 = vrot.lane.b32.xlu1 %v4205_v26, %s3685_s5 }
 0x499   : > { %v3464_v45 = vpop.eup %3463  ;;  %3479 = vtanh.f32 %v1186_v3 }
 0x49a   : > { %v3466_v31 = vpop.eup %3465  ;;  %v1345_v32 = vsub.f32 1.0, %v3464_v45  ;;  %3481 = vpow2.f32 %v3043_v30  ;;  %1476 = vrot.lane.b32.xlu0 %v4195_v59, %s3686_s6  ;;  %v1360_v34 = vmul.f32 %v3462_v28, %v1344_v29 }
 0x49b   : > { %v3468_v35 = vpop.eup %3467  ;;  %v1284_v36 = vadd.f32 1.0, %v3466_v31  ;;  %v1209_v38 = vpop.f32.mrb[72].mxu0 }
 0x49c   : > { %v3470_v39 = vpop.eup %3469  ;;  %v1210_v40 = vadd.f32 %v1209_v38, %v4137_v50  ;;  %v1211_v42 = vpop.f32.mrb[73].mxu0  ;;  %1478 = vrot.lane.b32.xlu1 %v4205_v26, %s3686_s6  ;;  %v4216_v43 = vmul.f32 %v4164_v37, %v1360_v34  ;;  %v1361_v47 = vmul.f32 %v3468_v35, %v1345_v32 }
 0x49d   : > { %3483 = vrcp.f32 %v1284_v36  ;;  %v1285_v49 = vadd.f32 1.0, %v3470_v39  ;;  %v1213_v52 = vpop.f32.mrb[74].mxu0  ;;  %v1212_v28 = vadd.f32 %v1211_v42, %v4143_v58 }
 0x49e   : > { %3485 = vtanh.f32 %v1192_v33  ;;  %v3044_v10 = vmul.f32 -1.442695, %v1210_v40  ;;  %v1214_v53 = vadd.f32 %v1213_v52, %v4137_v50  ;;  %v1215_v54 = vpop.f32.mrb[75].mxu0  ;;  %1416 = vrot.lane.b32.xlu0 %v4216_v43, %s3685_s5  ;;  %v4224_v55 = vmul.f32 %v4164_v37, %v1361_v47 }
 0x49f   : > { %v3472_v19 = vpop.eup %3471  ;;  %3487 = vrcp.f32 %v1285_v49  ;;  %v1216_v35 = vadd.f32 %v1215_v54, %v4143_v58 }
 0x4a0   : > { %v3474_v23 = vpop.eup %3473  ;;  %v1346_v24 = vsub.f32 1.0, %v3472_v19  ;;  %3489 = vpow2.f32 %v3044_v10  ;;  %v3045_v48 = vmul.f32 -1.442695, %v1214_v53  ;;  %1418 = vrot.lane.b32.xlu1 %v4224_v55, %s3685_s5 }
 0x4a1   : > { %v3476_v56 = vpop.eup %3475  ;;  %3491 = vtanh.f32 %v1196_v51 }
 0x4a2   : > { %v3478_v61 = vpop.eup %3477  ;;  %v1347_v63 = vsub.f32 1.0, %v3476_v56  ;;  %3493 = vpow2.f32 %v3045_v48  ;;  %1480 = vrot.lane.b32.xlu0 %v4216_v43, %s3686_s6  ;;  %v1362_v2 = vmul.f32 %v3474_v23, %v1346_v24 }
 0x4a3   : > { %v3480_v5 = vpop.eup %3479  ;;  %v1286_v9 = vadd.f32 1.0, %v3478_v61  ;;  %v1219_v13 = vpop.f32.mrb[32].mxu1 }
 0x4a4   : > { %v3482_v14 = vpop.eup %3481  ;;  %v1220_v15 = vadd.f32 %v1219_v13, %v4137_v50  ;;  %v1221_v16 = vpop.f32.mrb[33].mxu1  ;;  %1482 = vrot.lane.b32.xlu1 %v4224_v55, %s3686_s6  ;;  %v4235_v18 = vmul.f32 %v4164_v37, %v1362_v2  ;;  %v1363_v4 = vmul.f32 %v3480_v5, %v1347_v63 }
 0x4a5   : > { %3495 = vrcp.f32 %v1286_v9  ;;  %v1287_v8 = vadd.f32 1.0, %v3482_v14  ;;  %v1223_v12 = vpop.f32.mrb[34].mxu1  ;;  %v1222_v51 = vadd.f32 %v1221_v16, %v4143_v58 }
 0x4a6   : > { %3497 = vtanh.f32 %v1202_v1  ;;  %v3046_v22 = vmul.f32 -1.442695, %v1220_v15  ;;  %v1224_v57 = vadd.f32 %v1223_v12, %v4137_v50  ;;  %v1225_v60 = vpop.f32.mrb[35].mxu1  ;;  %1420 = vrot.lane.b32.xlu0 %v4235_v18, %s3685_s5  ;;  %v4243_v62 = vmul.f32 %v4164_v37, %v1363_v4 }
 0x4a7   : > { %v3484_v3 = vpop.eup %3483  ;;  %3499 = vrcp.f32 %v1287_v8  ;;  %v1226_v48 = vadd.f32 %v1225_v60, %v4143_v58 }
 0x4a8   : > { %v3486_v6 = vpop.eup %3485  ;;  %v1348_v17 = vsub.f32 1.0, %v3484_v3  ;;  %3501 = vpow2.f32 %v3046_v22  ;;  %v3047_v21 = vmul.f32 -1.442695, %v1224_v57  ;;  %1422 = vrot.lane.b32.xlu1 %v4243_v62, %s3685_s5 }
 0x4a9   : > { %v3488_v25 = vpop.eup %3487  ;;  %3503 = vtanh.f32 %v1206_v11 }
 0x4aa   : > { %v3490_v27 = vpop.eup %3489  ;;  %v1349_v50 = vsub.f32 1.0, %v3488_v25  ;;  %3505 = vpow2.f32 %v3047_v21  ;;  %1484 = vrot.lane.b32.xlu0 %v4235_v18, %s3686_s6  ;;  %v1364_v29 = vmul.f32 %v3486_v6, %v1348_v17 }
 0x4ab   : > { %v3492_v30 = vpop.eup %3491  ;;  %v1288_v45 = vadd.f32 1.0, %v3490_v27 }
 0x4ac   : > { %v3494_v31 = vpop.eup %3493  ;;  %1486 = vrot.lane.b32.xlu1 %v4243_v62, %s3686_s6  ;;  %v4253_v32 = vmul.f32 %v4164_v37, %v1364_v29  ;;  %v1365_v33 = vmul.f32 %v3492_v30, %v1349_v50 }
 0x4ad   : > { %3507 = vrcp.f32 %v1288_v45  ;;  %v1289_v34 = vadd.f32 1.0, %v3494_v31 }
 0x4ae   : > { %3509 = vtanh.f32 %v1212_v28  ;;  %1424 = vrot.lane.b32.xlu0 %v4253_v32, %s3685_s5  ;;  %v4259_v36 = vmul.f32 %v4164_v37, %v1365_v33 }
 0x4af   : > { %v3496_v38 = vpop.eup %3495  ;;  %3511 = vrcp.f32 %v1289_v34 }
 0x4b0   : > { %v3498_v39 = vpop.eup %3497  ;;  %v1350_v40 = vsub.f32 1.0, %v3496_v38  ;;  %1426 = vrot.lane.b32.xlu1 %v4259_v36, %s3685_s5  ;;  %3513 = vtanh.f32 %v1216_v35 }
 0x4b1   : > { %v3500_v42 = vpop.eup %3499 }
 0x4b2   : > { %v3502_v47 = vpop.eup %3501  ;;  %v1351_v49 = vsub.f32 1.0, %v3500_v42  ;;  %1488 = vrot.lane.b32.xlu0 %v4253_v32, %s3686_s6  ;;  %v1366_v52 = vmul.f32 %v3498_v39, %v1350_v40 }
 0x4b3   : > { %v3504_v10 = vpop.eup %3503  ;;  %v1290_v53 = vadd.f32 1.0, %v3502_v47 }
 0x4b4   : > { %v3506_v54 = vpop.eup %3505  ;;  %1490 = vrot.lane.b32.xlu1 %v4259_v36, %s3686_s6  ;;  %v4269_v19 = vmul.f32 %v4164_v37, %v1366_v52  ;;  %v1367_v23 = vmul.f32 %v3504_v10, %v1351_v49 }
 0x4b5   : > { %3515 = vrcp.f32 %v1290_v53  ;;  %v1291_v24 = vadd.f32 1.0, %v3506_v54 }
 0x4b6   : > { %3517 = vtanh.f32 %v1222_v51  ;;  %1428 = vrot.lane.b32.xlu0 %v4269_v19, %s3685_s5  ;;  %v4275_v56 = vmul.f32 %v4164_v37, %v1367_v23 }
 0x4b7   : > { %v3508_v61 = vpop.eup %3507  ;;  %3519 = vrcp.f32 %v1291_v24 }
 0x4b8   : > { %v3510_v63 = vpop.eup %3509  ;;  %v1352_v1 = vsub.f32 1.0, %v3508_v61  ;;  %1430 = vrot.lane.b32.xlu1 %v4275_v56, %s3685_s5  ;;  %3521 = vtanh.f32 %v1226_v48 }
 0x4b9   : > { %v3512_v2 = vpop.eup %3511 }
 0x4ba   : > { %v1353_v5 = vsub.f32 1.0, %v3512_v2  ;;  %1492 = vrot.lane.b32.xlu0 %v4269_v19, %s3686_s6  ;;  %v1368_v58 = vmul.f32 %v3510_v63, %v1352_v1  ;;  %v3514_v9 = vpop.eup %3513 }
 0x4bc   : > { %1494 = vrot.lane.b32.xlu1 %v4275_v56, %s3686_s6  ;;  %v4284_v13 = vmul.f32 %v4164_v37, %v1368_v58  ;;  %v1369_v14 = vmul.f32 %v3514_v9, %v1353_v5 }
 0x4be   : > { %1432 = vrot.lane.b32.xlu0 %v4284_v13, %s3685_s5  ;;  %v4289_v15 = vmul.f32 %v4164_v37, %v1369_v14 }
 0x4bf   : > { %v3516_v16 = vpop.eup %3515 }
 0x4c0   : > { %v3518_v4 = vpop.eup %3517  ;;  %v1354_v8 = vsub.f32 1.0, %v3516_v16  ;;  %1434 = vrot.lane.b32.xlu1 %v4289_v15, %s3685_s5 }
 0x4c1   : > { %v3520_v11 = vpop.eup %3519 }
 0x4c2   : > { %v1355_v12 = vsub.f32 1.0, %v3520_v11  ;;  %1496 = vrot.lane.b32.xlu0 %v4284_v13, %s3686_s6  ;;  %v1370_v22 = vmul.f32 %v3518_v4, %v1354_v8  ;;  %v3522_v57 = vpop.eup %3521 }
 0x4c4   : > { %1498 = vrot.lane.b32.xlu1 %v4289_v15, %s3686_s6  ;;  %v4298_v60 = vmul.f32 %v4164_v37, %v1370_v22  ;;  %v1371_v3 = vmul.f32 %v3522_v57, %v1355_v12 }
 0x4c6   : > { %1436 = vrot.lane.b32.xlu0 %v4298_v60, %s3685_s5  ;;  %v4303_v6 = vmul.f32 %v4164_v37, %v1371_v3 }
 0x4c8   : > { %1438 = vrot.lane.b32.xlu1 %v4303_v6, %s3685_s5 }
 0x4ca   : > { %1500 = vrot.lane.b32.xlu0 %v4298_v60, %s3686_s6 }
 0x4cc   : > { %1502 = vrot.lane.b32.xlu1 %v4303_v6, %s3686_s6 }
 0x500   : > { %v1409_v17 = vpop.permute.xlu0 %1408 }
 0x501   : > { %v1456_v25 = vadd.f32 %v1409_v17, %v4175_v20 }
 0x502   : > { %v1411_v21 = vpop.permute.xlu1 %1410 }
 0x503   : > { %v1457_v50 = vadd.f32 %v1411_v21, %v4184_v0 }
 0x504   : > { %v1473_v27 = vpop.permute.xlu0 %1472 }
 0x505   : > { %v1520_v28 = vadd.f32 %v1473_v27, %v1456_v25 }
 0x506   : > { %v1475_v29 = vpop.permute.xlu1 %1474 }
 0x507   : > { %v1521_v37 = vadd.f32 %v1475_v29, %v1457_v50  ;;  %v1536_v45 = vmax.f32 %v1520_v28, 0.0 }
 0x508   : > { %v1413_v30 = vpop.permute.xlu0 %1412 }
 0x509   : > { %v1537_v31 = vmax.f32 %v1521_v37, 0.0  ;;  %v1458_v35 = vadd.f32 %v1413_v30, %v4195_v59 }
 0x50a   : > { %v1415_v33 = vpop.permute.xlu1 %1414 }
 0x50b   : > { %v1556_v34 = vpack.c.bf16 %v1537_v31, %v1536_v45  ;;  %v1459_v39 = vadd.f32 %v1415_v33, %v4205_v26 }
 0x50c   : > { %v1477_v38 = vpop.permute.xlu0 %1476 }
 0x50d   : > { %v1522_v40 = vadd.f32 %v1477_v38, %v1458_v35  ;;  %3052 = vmatmul.mubr.msk.bf16.vlgmr.msra.gmra.mrb[36].mxu1 %vm1592_vm4, %v1556_v34 }
 0x50e   : > { %v1479_v20 = vpop.permute.xlu1 %1478  ;;  %1659 = vmatprep.mubr.bf16.mxu1 %v3684_v41 }
 0x50f   : > { %v1523_v0 = vadd.f32 %v1479_v20, %v1459_v39  ;;  %v1538_v47 = vmax.f32 %v1522_v40, 0.0 }
 0x510   : > { %v1417_v42 = vpop.permute.xlu0 %1416 }
 0x511   : > { %v1539_v49 = vmax.f32 %v1523_v0, 0.0  ;;  %v1460_v10 = vadd.f32 %v1417_v42, %v4216_v43 }
 0x512   : > { %v1419_v51 = vpop.permute.xlu1 %1418 }
 0x513   : > { %v1557_v52 = vpack.c.bf16 %v1539_v49, %v1538_v47  ;;  %v1461_v59 = vadd.f32 %v1419_v51, %v4224_v55 }
 0x514   : > { %v1481_v53 = vpop.permute.xlu0 %1480 }
 0x515   : > { %v1524_v54 = vadd.f32 %v1481_v53, %v1460_v10  ;;  %3053 = vmatmul.mubr.msk.bf16.gmra.mrb[40].mxu1 %vm1592_vm4, %v1557_v52 }
 0x516   : > { %v1483_v26 = vpop.permute.xlu1 %1482  ;;  %1669 = vmatprep.mubr.bf16.mxu1 %v3684_v41 }
 0x517   : > { %v1525_v23 = vadd.f32 %v1483_v26, %v1461_v59  ;;  %v1540_v48 = vmax.f32 %v1524_v54, 0.0 }
 0x518   : > { %v1421_v24 = vpop.permute.xlu0 %1420 }
 0x519   : > { %v1541_v61 = vmax.f32 %v1525_v23, 0.0  ;;  %v1462_v2 = vadd.f32 %v1421_v24, %v4235_v18  ;;  %v3651_v24 = vld [vmem:[%s4866_s1 + $0x1c0] ss:$8 sps:$4 sm:$0xff]  }
 0x51a   : > { %v1423_v63 = vpop.permute.xlu1 %1422 }
 0x51b   : > { %v1558_v1 = vpack.c.bf16 %v1541_v61, %v1540_v48  ;;  %v1463_v43 = vadd.f32 %v1423_v63, %v4243_v62 }
 0x51c   : > { %v1485_v5 = vpop.permute.xlu0 %1484 }
 0x51d   : > { %v1526_v58 = vadd.f32 %v1485_v5, %v1462_v2  ;;  %3054 = vmatmul.mubr.msk.bf16.gmra.mrb[44].mxu1 %vm1592_vm4, %v1558_v1 }
 0x51e   : > { %v1487_v55 = vpop.permute.xlu1 %1486  ;;  %1679 = vmatprep.mubr.bf16.mxu1 %v3684_v41 }
 0x51f   : > { %v1527_v9 = vadd.f32 %v1487_v55, %v1463_v43  ;;  %v1542_v16 = vmax.f32 %v1526_v58, 0.0 }
 0x520   : > { %v1425_v14 = vpop.permute.xlu0 %1424 }
 0x521   : > { %v1543_v4 = vmax.f32 %v1527_v9, 0.0  ;;  %v1464_v12 = vadd.f32 %v1425_v14, %v4253_v32 }
 0x522   : > { %v1427_v8 = vpop.permute.xlu1 %1426 }
 0x523   : > { %v1559_v11 = vpack.c.bf16 %v1543_v4, %v1542_v16  ;;  %v1465_v18 = vadd.f32 %v1427_v8, %v4259_v36 }
 0x524   : > { %v1489_v22 = vpop.permute.xlu0 %1488 }
 0x525   : > { %v1528_v57 = vadd.f32 %v1489_v22, %v1464_v12  ;;  %3055 = vmatmul.mubr.msk.bf16.gmra.mrb[48].mxu1 %vm1592_vm4, %v1559_v11 }
 0x526   : > { %v1491_v62 = vpop.permute.xlu1 %1490  ;;  %1689 = vmatprep.mubr.bf16.mxu1 %v3684_v41 }
 0x527   : > { %v1529_v3 = vadd.f32 %v1491_v62, %v1465_v18  ;;  %v1544_v21 = vmax.f32 %v1528_v57, 0.0 }
 0x528   : > { %v1429_v17 = vpop.permute.xlu0 %1428 }
 0x529   : > { %v1545_v25 = vmax.f32 %v1529_v3, 0.0  ;;  %v1466_v28 = vadd.f32 %v1429_v17, %v4269_v19 }
 0x52a   : > { %v1431_v27 = vpop.permute.xlu1 %1430 }
 0x52b   : > { %v1560_v50 = vpack.c.bf16 %v1545_v25, %v1544_v21  ;;  %v1467_v32 = vadd.f32 %v1431_v27, %v4275_v56 }
 0x52c   : > { %v1493_v29 = vpop.permute.xlu0 %1492 }
 0x52d   : > { %v1530_v37 = vadd.f32 %v1493_v29, %v1466_v28  ;;  %3056 = vmatmul.mubr.msk.bf16.gmra.mrb[52].mxu1 %vm1592_vm4, %v1560_v50 }
 0x52e   : > { %v1495_v36 = vpop.permute.xlu1 %1494  ;;  %1699 = vmatprep.mubr.bf16.mxu1 %v3684_v41 }
 0x52f   : > { %v1531_v30 = vadd.f32 %v1495_v36, %v1467_v32  ;;  %v1546_v31 = vmax.f32 %v1530_v37, 0.0 }
 0x530   : > { %v1433_v45 = vpop.permute.xlu0 %1432 }
 0x531   : > { %v1547_v33 = vmax.f32 %v1531_v30, 0.0  ;;  %v1468_v38 = vadd.f32 %v1433_v45, %v4284_v13 }
 0x532   : > { %v1435_v34 = vpop.permute.xlu1 %1434 }
 0x533   : > { %v1561_v35 = vpack.c.bf16 %v1547_v33, %v1546_v31  ;;  %v1469_v19 = vadd.f32 %v1435_v34, %v4289_v15 }
 0x534   : > { %v1497_v39 = vpop.permute.xlu0 %1496 }
 0x535   : > { %v1532_v40 = vadd.f32 %v1497_v39, %v1468_v38  ;;  %3057 = vmatmul.mubr.msk.bf16.gmra.mrb[56].mxu1 %vm1592_vm4, %v1561_v35 }
 0x536   : > { %v1499_v56 = vpop.permute.xlu1 %1498  ;;  %1709 = vmatprep.mubr.bf16.mxu1 %v3684_v41 }
 0x537   : > { %v1533_v20 = vadd.f32 %v1499_v56, %v1469_v19  ;;  %v1548_v42 = vmax.f32 %v1532_v40, 0.0 }
 0x538   : > { %v1437_v0 = vpop.permute.xlu0 %1436 }
 0x539   : > { %v1549_v47 = vmax.f32 %v1533_v20, 0.0  ;;  %v1470_v52 = vadd.f32 %v1437_v0, %v4298_v60  ;;  %v1566_v60 = vsub.s32 4, %v3806_v44 }
 0x53a   : > { %v1439_v49 = vpop.permute.xlu1 %1438 }
 0x53b   : > { %v1562_v51 = vpack.c.bf16 %v1549_v47, %v1548_v42  ;;  %v1471_v13 = vadd.f32 %v1439_v49, %v4303_v6  ;;  %v4349_v6 = vrot.slane %v4094_v7, %v1566_v60 }
 0x53c   : > { %v1501_v10 = vpop.permute.xlu0 %1500 }
 0x53d   : > { %v1534_v53 = vadd.f32 %v1501_v10, %v1470_v52  ;;  %3058 = vmatmul.mubr.msk.bf16.gmra.mrb[60].mxu1 %vm1592_vm4, %v1562_v51 }
 0x53e   : > { %v1503_v15 = vpop.permute.xlu1 %1502  ;;  %1719 = vmatprep.mubr.bf16.mxu1 %v3684_v41 }
 0x53f   : > { %v1535_v59 = vadd.f32 %v1503_v15, %v1471_v13  ;;  %v1550_v54 = vmax.f32 %v1534_v53, 0.0 }
 0x541   : > { %v1551_v26 = vmax.f32 %v1535_v59, 0.0 }
 0x543   : > { %v1563_v23 = vpack.c.bf16 %v1551_v26, %v1550_v54 }
 0x545   : > { %3059 = vmatmul.mubr.msk.bf16.gmra.mrb[64].mxu1 %vm1592_vm4, %v1563_v23 }
 0x546   : > { %3230 = vmatprep.mubr.bf16.mxu1 %v3651_v24 }
 0x5e0   : > { %v4351_v48 = vpop.f32.mrb[36].mxu1 }
 0x5e1   : > { %v1653_v41 = vpop.f32.mrb[37].mxu1 }
 0x5e2   : > { %v4354_v61 = vadd.f32 %v1653_v41, %v4349_v6  ;;  %v4356_v63 = vpop.f32.mrb[38].mxu1 }
 0x5e3   : > { %v1657_v1 = vpop.f32.mrb[39].mxu1 }
 0x5e4   : > { %v1730_v2 = vmul.f32 0.5, %v4354_v61  ;;  %v4360_v5 = vadd.f32 %v1657_v1, %v4349_v6 }
 0x5e6   : > { %v1746_v43 = vmul.f32 1.442695, %v1730_v2  ;;  %v1731_v58 = vmul.f32 0.5, %v4360_v5 }
 0x5e8   : > { %3523 = vpow2.f32 %v1746_v43  ;;  %v1748_v7 = vmul.f32 1.442695, %v1731_v58  ;;  %v4363_v55 = vpop.f32.mrb[40].mxu1 }
 0x5e9   : > { %v1663_v9 = vpop.f32.mrb[41].mxu1 }
 0x5ea   : > { %3525 = vpow2.f32 %v1748_v7  ;;  %v4366_v14 = vadd.f32 %v1663_v9, %v4349_v6  ;;  %v4368_v16 = vpop.f32.mrb[42].mxu1 }
 0x5eb   : > { %v1667_v4 = vpop.f32.mrb[43].mxu1 }
 0x5ec   : > { %v1732_v8 = vmul.f32 0.5, %v4366_v14  ;;  %v4372_v11 = vadd.f32 %v1667_v4, %v4349_v6 }
 0x5ee   : > { %v1750_v12 = vmul.f32 1.442695, %v1732_v8  ;;  %v1733_v22 = vmul.f32 0.5, %v4372_v11 }
 0x5f0   : > { %3527 = vpow2.f32 %v1750_v12  ;;  %v1752_v18 = vmul.f32 1.442695, %v1733_v22  ;;  %v4375_v57 = vpop.f32.mrb[44].mxu1 }
 0x5f1   : > { %v1673_v62 = vpop.f32.mrb[45].mxu1 }
 0x5f2   : > { %v3524_v3 = vpop.eup %3523  ;;  %3529 = vpow2.f32 %v1752_v18  ;;  %v4378_v17 = vadd.f32 %v1673_v62, %v4349_v6  ;;  %v4380_v21 = vpop.f32.mrb[46].mxu1 }
 0x5f3   : > { %1794 = vrot.lane.b32.xlu0 %v3524_v3, %s3687_s10  ;;  %v1677_v25 = vpop.f32.mrb[47].mxu1 }
 0x5f4   : > { %v3526_v27 = vpop.eup %3525  ;;  %v1734_v50 = vmul.f32 0.5, %v4378_v17  ;;  %v4385_v28 = vadd.f32 %v1677_v25, %v4349_v6 }
 0x5f5   : > { %1796 = vrot.lane.b32.xlu1 %v3526_v27, %s3687_s10 }
 0x5f6   : > { %v1754_v29 = vmul.f32 1.442695, %v1734_v50  ;;  %v1735_v32 = vmul.f32 0.5, %v4385_v28 }
 0x5f8   : > { %3531 = vpow2.f32 %v1754_v29  ;;  %v1756_v37 = vmul.f32 1.442695, %v1735_v32  ;;  %v4389_v36 = vpop.f32.mrb[48].mxu1 }
 0x5f9   : > { %v1683_v30 = vpop.f32.mrb[49].mxu1 }
 0x5fa   : > { %v3528_v45 = vpop.eup %3527  ;;  %3533 = vpow2.f32 %v1756_v37  ;;  %v4392_v31 = vadd.f32 %v1683_v30, %v4349_v6  ;;  %v4394_v33 = vpop.f32.mrb[50].mxu1 }
 0x5fb   : > { %1798 = vrot.lane.b32.xlu0 %v3528_v45, %s3687_s10  ;;  %v1687_v34 = vpop.f32.mrb[51].mxu1 }
 0x5fc   : > { %v3530_v35 = vpop.eup %3529  ;;  %v1736_v38 = vmul.f32 0.5, %v4392_v31  ;;  %v4399_v39 = vadd.f32 %v1687_v34, %v4349_v6 }
 0x5fd   : > { %1800 = vrot.lane.b32.xlu1 %v3530_v35, %s3687_s10 }
 0x5fe   : > { %v1758_v19 = vmul.f32 1.442695, %v1736_v38  ;;  %v1737_v40 = vmul.f32 0.5, %v4399_v39 }
 0x600   : > { %3535 = vpow2.f32 %v1758_v19  ;;  %v1760_v56 = vmul.f32 1.442695, %v1737_v40  ;;  %v4403_v20 = vpop.f32.mrb[52].mxu1 }
 0x601   : > { %v1693_v0 = vpop.f32.mrb[53].mxu1 }
 0x602   : > { %v3532_v42 = vpop.eup %3531  ;;  %3537 = vpow2.f32 %v1760_v56  ;;  %v4406_v47 = vadd.f32 %v1693_v0, %v4349_v6  ;;  %v4408_v49 = vpop.f32.mrb[54].mxu1 }
 0x603   : > { %1802 = vrot.lane.b32.xlu0 %v3532_v42, %s3687_s10  ;;  %v1697_v51 = vpop.f32.mrb[55].mxu1 }
 0x604   : > { %v3534_v52 = vpop.eup %3533  ;;  %v1738_v10 = vmul.f32 0.5, %v4406_v47  ;;  %v4413_v13 = vadd.f32 %v1697_v51, %v4349_v6 }
 0x605   : > { %1804 = vrot.lane.b32.xlu1 %v3534_v52, %s3687_s10 }
 0x606   : > { %v1762_v53 = vmul.f32 1.442695, %v1738_v10  ;;  %v1739_v15 = vmul.f32 0.5, %v4413_v13 }
 0x608   : > { %3539 = vpow2.f32 %v1762_v53  ;;  %v1764_v59 = vmul.f32 1.442695, %v1739_v15  ;;  %v4417_v54 = vpop.f32.mrb[56].mxu1 }
 0x609   : > { %v1703_v26 = vpop.f32.mrb[57].mxu1 }
 0x60a   : > { %v3536_v23 = vpop.eup %3535  ;;  %3541 = vpow2.f32 %v1764_v59  ;;  %v4420_v24 = vadd.f32 %v1703_v26, %v4349_v6  ;;  %v4422_v41 = vpop.f32.mrb[58].mxu1  ;;  %v3424_v59 = vld [vmem:[%s4866_s1 + $0x180] ss:$8 sps:$4 sm:$0xff]  }
 0x60b   : > { %1806 = vrot.lane.b32.xlu0 %v3536_v23, %s3687_s10  ;;  %v1707_v1 = vpop.f32.mrb[59].mxu1  ;;  %3176 = vmatprep.subr.bf16.mxu0 %v3424_v59  ;;  %v3652_v23 = vld [vmem:[%s3726_s17] sm:$0xff] }
 0x60c   : > { %v3538_v2 = vpop.eup %3537  ;;  %v1740_v43 = vmul.f32 0.5, %v4420_v24  ;;  %v4427_v58 = vadd.f32 %v1707_v1, %v4349_v6  ;;  %3177 = vmatpush3.bf16.msra.mxu0 %v3424_v59  ;;  %v3661_v59 = vld [vmem:[%s3726_s17 + $0x48] sm:$0xff] }
 0x60d   : > { %1808 = vrot.lane.b32.xlu1 %v3538_v2, %s3687_s10 }
 0x60e   : > { %v1766_v7 = vmul.f32 1.442695, %v1740_v43  ;;  %v1741_v9 = vmul.f32 0.5, %v4427_v58  ;;  %v3653_v43 = vld [vmem:[%s3726_s17 + $0x8] sm:$0xff] }
 0x610   : > { %3543 = vpow2.f32 %v1766_v7  ;;  %v1768_v4 = vmul.f32 1.442695, %v1741_v9  ;;  %v4431_v8 = vpop.f32.mrb[60].mxu1 }
 0x611   : > { %v1713_v12 = vpop.f32.mrb[61].mxu1 }
 0x612   : > { %v3540_v22 = vpop.eup %3539  ;;  %3545 = vpow2.f32 %v1768_v4  ;;  %v4434_v18 = vadd.f32 %v1713_v12, %v4349_v6  ;;  %v4436_v62 = vpop.f32.mrb[62].mxu1  ;;  %v3654_v4 = vld [vmem:[%s3726_s17 + $0x10] sm:$0xff] }
 0x613   : > { %1810 = vrot.lane.b32.xlu0 %v3540_v22, %s3687_s10  ;;  %v1717_v3 = vpop.f32.mrb[63].mxu1 }
 0x614   : > { %v3542_v25 = vpop.eup %3541  ;;  %v1742_v27 = vmul.f32 0.5, %v4434_v18  ;;  %v4441_v50 = vadd.f32 %v1717_v3, %v4349_v6  ;;  %v3655_v3 = vld [vmem:[%s3726_s17 + $0x18] sm:$0xff] }
 0x615   : > { %1812 = vrot.lane.b32.xlu1 %v3542_v25, %s3687_s10 }
 0x616   : > { %v1770_v29 = vmul.f32 1.442695, %v1742_v27  ;;  %v1743_v32 = vmul.f32 0.5, %v4441_v50 }
 0x618   : > { %3547 = vpow2.f32 %v1770_v29  ;;  %v1772_v37 = vmul.f32 1.442695, %v1743_v32  ;;  %v4445_v30 = vpop.f32.mrb[64].mxu1  ;;  %v3656_v29 = vld [vmem:[%s3726_s17 + $0x20] sm:$0xff] }
 0x619   : > { %v1723_v45 = vpop.f32.mrb[65].mxu1 }
 0x61a   : > { %v3544_v34 = vpop.eup %3543  ;;  %3549 = vpow2.f32 %v1772_v37  ;;  %v4448_v35 = vadd.f32 %v1723_v45, %v4349_v6  ;;  %v4450_v38 = vpop.f32.mrb[66].mxu1  ;;  %v3657_v45 = vld [vmem:[%s3726_s17 + $0x28] sm:$0xff] }
 0x61b   : > { %1814 = vrot.lane.b32.xlu0 %v3544_v34, %s3687_s10  ;;  %v1727_v19 = vpop.f32.mrb[67].mxu1 }
 0x61c   : > { %v3546_v40 = vpop.eup %3545  ;;  %v1744_v56 = vmul.f32 0.5, %v4448_v35  ;;  %v4455_v0 = vadd.f32 %v1727_v19, %v4349_v6 }
 0x61d   : > { %1816 = vrot.lane.b32.xlu1 %v3546_v40, %s3687_s10  ;;  %v3658_v40 = vld [vmem:[%s3726_s17 + $0x30] sm:$0xff] }
 0x61e   : > { %v1774_v42 = vmul.f32 1.442695, %v1744_v56  ;;  %v1745_v51 = vmul.f32 0.5, %v4455_v0 }
 0x620   : > { %3551 = vpow2.f32 %v1774_v42  ;;  %v1776_v52 = vmul.f32 1.442695, %v1745_v51  ;;  %v3659_v51 = vld [vmem:[%s3726_s17 + $0x38] sm:$0xff] }
 0x622   : > { %v3548_v10 = vpop.eup %3547  ;;  %3553 = vpow2.f32 %v1776_v52 }
 0x623   : > { %1818 = vrot.lane.b32.xlu0 %v3548_v10, %s3687_s10 }
 0x624   : > { %v3550_v53 = vpop.eup %3549 }
 0x625   : > { %1820 = vrot.lane.b32.xlu1 %v3550_v53, %s3687_s10  ;;  %v3660_v53 = vld [vmem:[%s3726_s17 + $0x40] sm:$0xff] }
 0x62a   : > { %v3552_v15 = vpop.eup %3551 }
 0x62b   : > { %1822 = vrot.lane.b32.xlu0 %v3552_v15, %s3687_s10 }
 0x62c   : > { %v3554_v6 = vpop.eup %3553 }
 0x62d   : > { %1824 = vrot.lane.b32.xlu1 %v3554_v6, %s3687_s10 }
 0x665   : > { %v1795_v26 = vpop.permute.xlu0 %1794 }
 0x666   : > { %v1842_v1 = vmul.f32 %v3652_v23, %v1795_v26 }
 0x667   : > { %v1797_v2 = vpop.permute.xlu1 %1796 }
 0x668   : > { %v1843_v7 = vmul.f32 %v3653_v43, %v1797_v2  ;;  %1874 = vrot.lane.b32.xlu0 %v1842_v1, %s3688_s15  ;;  %v3662_v1 = vld [vmem:[%s3726_s17 + $0x50] sm:$0xff] }
 0x66a   : > { %1876 = vrot.lane.b32.xlu1 %v1843_v7, %s3688_s15  ;;  %v3663_v7 = vld [vmem:[%s3726_s17 + $0x58] sm:$0xff] }
 0x66d   : > { %v1799_v9 = vpop.permute.xlu0 %1798 }
 0x66e   : > { %v1844_v12 = vmul.f32 %v3654_v4, %v1799_v9 }
 0x66f   : > { %v1801_v22 = vpop.permute.xlu1 %1800 }
 0x670   : > { %v1845_v25 = vmul.f32 %v3655_v3, %v1801_v22  ;;  %1878 = vrot.lane.b32.xlu0 %v1844_v12, %s3688_s15  ;;  %v3664_v12 = vld [vmem:[%s3726_s17 + $0x60] sm:$0xff] }
 0x672   : > { %1880 = vrot.lane.b32.xlu1 %v1845_v25, %s3688_s15  ;;  %v3665_v25 = vld [vmem:[%s3726_s17 + $0x68] sm:$0xff] }
 0x675   : > { %v1803_v27 = vpop.permute.xlu0 %1802 }
 0x676   : > { %v1846_v32 = vmul.f32 %v3656_v29, %v1803_v27 }
 0x677   : > { %v1805_v37 = vpop.permute.xlu1 %1804 }
 0x678   : > { %v1847_v34 = vmul.f32 %v3657_v45, %v1805_v37  ;;  %1882 = vrot.lane.b32.xlu0 %v1846_v32, %s3688_s15  ;;  %v1567_v32 = vrot.slane %v3814_v46, %v1566_v60  ;;  %v3666_v37 = vld [vmem:[%s3726_s17 + $0x70] sm:$0xff] }
 0x67a   : > { %1884 = vrot.lane.b32.xlu1 %v1847_v34, %s3688_s15  ;;  %v1666_v60 = vadd.f32 %v4368_v16, %v1567_v32  ;;  %v1702_v16 = vadd.f32 %v4417_v54, %v1567_v32 }
 0x67d   : > { %v1807_v19 = vpop.permute.xlu0 %1806 }
 0x67e   : > { %v1848_v56 = vmul.f32 %v3658_v40, %v1807_v19  ;;  %v3667_v19 = vld [vmem:[%s3726_s17 + $0x78] sm:$0xff]  ;;  %s3690_s17 = smov 20  }
 0x67f   : > { %v1809_v42 = vpop.permute.xlu1 %1808 }
 0x680   : > { %v1849_v52 = vmul.f32 %v3659_v51, %v1809_v42  ;;  %1886 = vrot.lane.b32.xlu0 %v1848_v56, %s3688_s15  ;;  %v1652_v56 = vadd.f32 %v4351_v48, %v1567_v32  ;;  %v1656_v42 = vadd.f32 %v4356_v63, %v1567_v32  ;;  %v1662_v51 = vadd.f32 %v4363_v55, %v1567_v32 }
 0x681   : > { %v1682_v48 = vadd.f32 %v4389_v36, %v1567_v32  ;;  %v1692_v63 = vadd.f32 %v4403_v20, %v1567_v32  ;;  %v1696_v55 = vadd.f32 %v4408_v49, %v1567_v32  ;;  %v1716_v36 = vadd.f32 %v4436_v62, %v1567_v32 }
 0x682   : > { %1888 = vrot.lane.b32.xlu1 %v1849_v52, %s3688_s15  ;;  %v1672_v52 = vadd.f32 %v4375_v57, %v1567_v32  ;;  %v1706_v57 = vadd.f32 %v4422_v41, %v1567_v32  ;;  %v1726_v20 = vadd.f32 %v4450_v38, %v1567_v32 }
 0x685   : > { %v1811_v10 = vpop.permute.xlu0 %1810 }
 0x686   : > { %v1850_v15 = vmul.f32 %v3660_v53, %v1811_v10  ;;  %v1676_v10 = vadd.f32 %v4380_v21, %v1567_v32  ;;  %v1686_v53 = vadd.f32 %v4394_v33, %v1567_v32  ;;  %v1712_v21 = vadd.f32 %v4431_v8, %v1567_v32 }
 0x687   : > { %v1813_v6 = vpop.permute.xlu1 %1812  ;;  %v1722_v33 = vadd.f32 %v4445_v30, %v1567_v32 }
 0x688   : > { %v1851_v26 = vmul.f32 %v3661_v59, %v1813_v6  ;;  %1890 = vrot.lane.b32.xlu0 %v1850_v15, %s3688_s15 }
 0x68a   : > { %1892 = vrot.lane.b32.xlu1 %v1851_v26, %s3688_s15 }
 0x68d   : > { %v1815_v23 = vpop.permute.xlu0 %1814 }
 0x68e   : > { %v1852_v2 = vmul.f32 %v3662_v1, %v1815_v23 }
 0x68f   : > { %v1817_v43 = vpop.permute.xlu1 %1816 }
 0x690   : > { %v1853_v9 = vmul.f32 %v3663_v7, %v1817_v43  ;;  %1894 = vrot.lane.b32.xlu0 %v1852_v2, %s3688_s15 }
 0x692   : > { %1896 = vrot.lane.b32.xlu1 %v1853_v9, %s3688_s15 }
 0x695   : > { %v1819_v4 = vpop.permute.xlu0 %1818 }
 0x696   : > { %v1854_v22 = vmul.f32 %v3664_v12, %v1819_v4 }
 0x697   : > { %v1821_v3 = vpop.permute.xlu1 %1820 }
 0x698   : > { %v1855_v27 = vmul.f32 %v3665_v25, %v1821_v3  ;;  %1898 = vrot.lane.b32.xlu0 %v1854_v22, %s3688_s15 }
 0x69a   : > { %1900 = vrot.lane.b32.xlu1 %v1855_v27, %s3688_s15 }
 0x69d   : > { %v1823_v29 = vpop.permute.xlu0 %1822 }
 0x69e   : > { %v1856_v45 = vmul.f32 %v3666_v37, %v1823_v29 }
 0x69f   : > { %v1825_v34 = vpop.permute.xlu1 %1824 }
 0x6a0   : > { %v1857_v40 = vmul.f32 %v3667_v19, %v1825_v34  ;;  %1902 = vrot.lane.b32.xlu0 %v1856_v45, %s3688_s15  ;;  %v3425_v19 = vld [vmem:[%s4866_s1 + $0x190] ss:$8 sps:$4 sm:$0xff]  }
 0x6a1   : > { %3194 = vmatprep.subr.bf16.mxu0 %v3425_v19 }
 0x6a2   : > { %1904 = vrot.lane.b32.xlu1 %v1857_v40, %s3688_s15  ;;  %v3426_v40 = vld [vmem:[%s4866_s1 + $0x1a0] ss:$8 sps:$4 sm:$0xff]  }
 0x6a4   : > { %2712 = vrot.lane.b32.xlu0 %v1652_v56, %s3689_s16 }
 0x6a6   : > { %2714 = vrot.lane.b32.xlu1 %v1656_v42, %s3689_s16 }
 0x6a8   : > { %2716 = vrot.lane.b32.xlu0 %v1662_v51, %s3689_s16 }
 0x6aa   : > { %2718 = vrot.lane.b32.xlu1 %v1666_v60, %s3689_s16 }
 0x6ac   : > { %2720 = vrot.lane.b32.xlu0 %v1672_v52, %s3689_s16 }
 0x6ae   : > { %2722 = vrot.lane.b32.xlu1 %v1676_v10, %s3689_s16 }
 0x6b0   : > { %2724 = vrot.lane.b32.xlu0 %v1682_v48, %s3689_s16 }
 0x6b2   : > { %2726 = vrot.lane.b32.xlu1 %v1686_v53, %s3689_s16 }
 0x6b4   : > { %2728 = vrot.lane.b32.xlu0 %v1692_v63, %s3689_s16 }
 0x6b6   : > { %2730 = vrot.lane.b32.xlu1 %v1696_v55, %s3689_s16 }
 0x6b8   : > { %2732 = vrot.lane.b32.xlu0 %v1702_v16, %s3689_s16 }
 0x6ba   : > { %2734 = vrot.lane.b32.xlu1 %v1706_v57, %s3689_s16 }
 0x6bc   : > { %2736 = vrot.lane.b32.xlu0 %v1712_v21, %s3689_s16 }
 0x6be   : > { %2738 = vrot.lane.b32.xlu1 %v1716_v36, %s3689_s16 }
 0x6c0   : > { %2740 = vrot.lane.b32.xlu0 %v1722_v33, %s3689_s16 }
 0x6c2   : > { %2742 = vrot.lane.b32.xlu1 %v1726_v20, %s3689_s16  ;;  %s4768_s16 = scalar_lea.vmem %s4867_s2, %s2953_s14 }
 0x6c4   : > { %2776 = vrot.lane.b32.xlu0 %v4354_v61, %s3690_s17 }
 0x6c6   : > { %2778 = vrot.lane.b32.xlu1 %v4360_v5, %s3690_s17 }
 0x6c8   : > { %2780 = vrot.lane.b32.xlu0 %v4366_v14, %s3690_s17 }
 0x6ca   : > { %2782 = vrot.lane.b32.xlu1 %v4372_v11, %s3690_s17 }
 0x6cc   : > { %2784 = vrot.lane.b32.xlu0 %v4378_v17, %s3690_s17 }
 0x6ce   : > { %2786 = vrot.lane.b32.xlu1 %v4385_v28, %s3690_s17 }
 0x6d0   : > { %2788 = vrot.lane.b32.xlu0 %v4392_v31, %s3690_s17 }
 0x6d2   : > { %2790 = vrot.lane.b32.xlu1 %v4399_v39, %s3690_s17 }
 0x6d4   : > { %2792 = vrot.lane.b32.xlu0 %v4406_v47, %s3690_s17 }
 0x6d6   : > { %2794 = vrot.lane.b32.xlu1 %v4413_v13, %s3690_s17 }
 0x6d8   : > { %2796 = vrot.lane.b32.xlu0 %v4420_v24, %s3690_s17 }
 0x6da   : > { %2798 = vrot.lane.b32.xlu1 %v4427_v58, %s3690_s17  ;;  %v1875_v61 = vpop.permute.xlu0 %1874 }
 0x6db   : > { %v1922_v14 = vadd.f32 %v1875_v61, %v1652_v56  ;;  %v1950_v56 = vsub.s32 5, %v3806_v44 }
 0x6dc   : > { %v1877_v5 = vpop.permute.xlu1 %1876 }
 0x6dd   : > { %v1923_v11 = vadd.f32 %v1877_v5, %v1656_v42  ;;  %v1951_v42 = vrot.slane %v3814_v46, %v1950_v56 }
 0x6df   : > { %v1940_v17 = vpack.c.bf16 %v1923_v11, %v1922_v14 }
 0x6e1   : > { %3178 = vmatprep.mubr.msk.bf16.mxu0 %vm227_vm0, %v1940_v17 }
 0x6e2   : > { %v1879_v28 = vpop.permute.xlu0 %1878 }
 0x6e3   : > { %v1924_v39 = vadd.f32 %v1879_v28, %v1662_v51 }
 0x6e4   : > { %v1881_v31 = vpop.permute.xlu1 %1880 }
 0x6e5   : > { %v1925_v47 = vadd.f32 %v1881_v31, %v1666_v60 }
 0x6e7   : > { %v1941_v49 = vpack.c.bf16 %v1925_v47, %v1924_v39 }
 0x6e9   : > { %3179 = vmatmul.mubr.msk.bf16.vlgmr.msra.gmra.mrb[76].mxu0 %vm227_vm0, %v1941_v49 }
 0x6ea   : > { %v1883_v13 = vpop.permute.xlu0 %1882  ;;  %3195 = vmatpush3.bf16.msra.mxu0 %v3425_v19 }
 0x6eb   : > { %v1926_v24 = vadd.f32 %v1883_v13, %v1672_v52  ;;  %3196 = vmatprep.subr.bf16.mxu0 %v3426_v40 }
 0x6ec   : > { %v1885_v54 = vpop.permute.xlu1 %1884 }
 0x6ed   : > { %v1927_v41 = vadd.f32 %v1885_v54, %v1676_v10 }
 0x6ee   : > { %3197 = vmatpush3.bf16.msra.mxu0 %v3426_v40 }
 0x6ef   : > { %v1942_v8 = vpack.c.bf16 %v1927_v41, %v1926_v24 }
 0x6f1   : > { %3182 = vmatprep.mubr.msk.bf16.mxu0 %vm227_vm0, %v1942_v8 }
 0x6f2   : > { %v1887_v58 = vpop.permute.xlu0 %1886 }
 0x6f3   : > { %v1928_v30 = vadd.f32 %v1887_v58, %v1682_v48 }
 0x6f4   : > { %v1889_v62 = vpop.permute.xlu1 %1888 }
 0x6f5   : > { %v1929_v38 = vadd.f32 %v1889_v62, %v1686_v53 }
 0x6f7   : > { %v1943_v15 = vpack.c.bf16 %v1929_v38, %v1928_v30 }
 0x6f9   : > { %3183 = vmatmul.mubr.msk.bf16.gmra.mrb[80].mxu0 %vm227_vm0, %v1943_v15 }
 0x6fa   : > { %v1891_v6 = vpop.permute.xlu0 %1890 }
 0x6fb   : > { %v1930_v26 = vadd.f32 %v1891_v6, %v1692_v63 }
 0x6fc   : > { %v1893_v59 = vpop.permute.xlu1 %1892 }
 0x6fd   : > { %v1931_v23 = vadd.f32 %v1893_v59, %v1696_v55 }
 0x6ff   : > { %v1944_v1 = vpack.c.bf16 %v1931_v23, %v1930_v26 }
 0x701   : > { %3186 = vmatprep.mubr.msk.bf16.mxu0 %vm227_vm0, %v1944_v1 }
 0x702   : > { %v1895_v2 = vpop.permute.xlu0 %1894 }
 0x703   : > { %v1932_v7 = vadd.f32 %v1895_v2, %v1702_v16 }
 0x704   : > { %v1897_v43 = vpop.permute.xlu1 %1896 }
 0x705   : > { %v1933_v9 = vadd.f32 %v1897_v43, %v1706_v57  ;;  %v2333_v43 = vld [vmem:[%s4866_s1 + $0x1b0] sm:$0xf] }
 0x706   : > { %3328 = vmatprep.subr.msk.bf16.mxu0 %vm2371_vm5, %v2333_v43 }
 0x707   : > { %v1945_v4 = vpack.c.bf16 %v1933_v9, %v1932_v7  ;;  %v2373_v7 = vsel %vm2371_vm5, %v2333_v43, 0 }
 0x709   : > { %3187 = vmatmul.mubr.msk.bf16.gmra.mrb[84].mxu0 %vm227_vm0, %v1945_v4 }
 0x70a   : > { %v1899_v12 = vpop.permute.xlu0 %1898 }
 0x70b   : > { %v1934_v3 = vadd.f32 %v1899_v12, %v1712_v21 }
 0x70c   : > { %v1901_v22 = vpop.permute.xlu1 %1900 }
 0x70d   : > { %v1935_v25 = vadd.f32 %v1901_v22, %v1716_v36 }
 0x70f   : > { %v1946_v27 = vpack.c.bf16 %v1935_v25, %v1934_v3 }
 0x711   : > { %3190 = vmatprep.mubr.msk.bf16.mxu0 %vm227_vm0, %v1946_v27 }
 0x712   : > { %v1903_v29 = vpop.permute.xlu0 %1902 }
 0x713   : > { %v1936_v37 = vadd.f32 %v1903_v29, %v1722_v33 }
 0x714   : > { %v1905_v32 = vpop.permute.xlu1 %1904 }
 0x715   : > { %v1937_v45 = vadd.f32 %v1905_v32, %v1726_v20 }
 0x717   : > { %v1947_v34 = vpack.c.bf16 %v1937_v45, %v1936_v37 }
 0x719   : > { %3191 = vmatmul.mubr.msk.bf16.gmra.mrb[88].mxu0 %vm227_vm0, %v1947_v34 }
 0x7bc   : > { %v3180_v51 = vpop.f32.mrb[76].mxu0 }
 0x7bd   : > { %v2016_v60 = vpop.f32.mrb[77].mxu0  ;;  %v2025_v10 = vadd.f32 %v3180_v51, %v1951_v42 }
 0x7be   : > { %v3181_v52 = vpop.f32.mrb[78].mxu0  ;;  %v2017_v63 = vadd.f32 %v2016_v60, %v1951_v42 }
 0x7bf   : > { %v2028_v48 = vadd.f32 %v3181_v52, %v1951_v42  ;;  %v2019_v53 = vpop.f32.mrb[79].mxu0 }
 0x7c0   : > { %v2020_v55 = vadd.f32 %v2019_v53, %v1951_v42 }
 0x7c1   : > { %v2084_v16 = vpack.c.bf16 %v2028_v48, %v2025_v10 }
 0x7c2   : > { %v2083_v57 = vpack.c.bf16 %v2020_v55, %v2017_v63 }
 0x7c4   : > { %3198 = vmatprep.mubr.msk.bf16.mxu0 %vm1592_vm4, %v2083_v57  ;;  %v3669_v57 = vld [vmem:[%s4866_s1 + $0x1e0] ss:$8 sps:$4 sm:$0xff]  }
 0x7c5   : > { %3199 = vmatmul.mubr.msk.bf16.vlgmr.msra.gmra.mrb[92].mxu0 %vm1592_vm4, %v2084_v16  ;;  %v3668_v16 = vld [vmem:[%s4866_s1 + $0x1d0] ss:$8 sps:$4 sm:$0xff]  }
 0x7c6   : > { %3247 = vmatpush3.bf16.msra.mxu0 %v2373_v7 }
 0x7cc   : > { %v3184_v21 = vpop.f32.mrb[80].mxu0 }
 0x7cd   : > { %v2032_v36 = vpop.f32.mrb[81].mxu0  ;;  %v2041_v20 = vadd.f32 %v3184_v21, %v1951_v42  ;;  %v3670_v21 = vld [vmem:[%s4866_s1 + $0x1f0] ss:$8 sps:$4 sm:$0xff]  }
 0x7ce   : > { %v3185_v33 = vpop.f32.mrb[82].mxu0  ;;  %v2033_v14 = vadd.f32 %v2032_v36, %v1951_v42  ;;  %v3671_v36 = vld [vmem:[%s4866_s1 + $0x200] ss:$8 sps:$4 sm:$0xff]  }
 0x7cf   : > { %v2044_v61 = vadd.f32 %v3185_v33, %v1951_v42  ;;  %v2035_v5 = vpop.f32.mrb[83].mxu0  ;;  %v3672_v33 = vld [vmem:[%s4866_s1 + $0x210] ss:$8 sps:$4 sm:$0xff]  }
 0x7d0   : > { %v2036_v11 = vadd.f32 %v2035_v5, %v1951_v42  ;;  %v2234_v5 = vsub.s32 6, %v3806_v44 }
 0x7d1   : > { %v2086_v17 = vpack.c.bf16 %v2044_v61, %v2041_v20  ;;  %v3673_v20 = vld [vmem:[%s4866_s1 + $0x220] ss:$8 sps:$4 sm:$0xff]   ;;  %v3674_v61 = vld [vmem:[%s4866_s1 + $0x230] ss:$8 sps:$4 sm:$0xff]  }
 0x7d2   : > { %v2085_v28 = vpack.c.bf16 %v2036_v11, %v2033_v14  ;;  %v2235_v14 = vrot.slane %v3814_v46, %v2234_v5 }
 0x7d4   : > { %3202 = vmatprep.mubr.msk.bf16.mxu0 %vm1592_vm4, %v2085_v28 }
 0x7d5   : > { %3203 = vmatmul.mubr.msk.bf16.gmra.mrb[96].mxu0 %vm1592_vm4, %v2086_v17 }
 0x7dc   : > { %v3188_v31 = vpop.f32.mrb[84].mxu0 }
 0x7dd   : > { %v2048_v39 = vpop.f32.mrb[85].mxu0  ;;  %v2057_v49 = vadd.f32 %v3188_v31, %v1951_v42 }
 0x7de   : > { %v3189_v47 = vpop.f32.mrb[86].mxu0  ;;  %v2049_v24 = vadd.f32 %v2048_v39, %v1951_v42 }
 0x7df   : > { %v2060_v13 = vadd.f32 %v3189_v47, %v1951_v42  ;;  %v2051_v54 = vpop.f32.mrb[87].mxu0 }
 0x7e0   : > { %v2052_v41 = vadd.f32 %v2051_v54, %v1951_v42 }
 0x7e1   : > { %v2088_v8 = vpack.c.bf16 %v2060_v13, %v2057_v49 }
 0x7e2   : > { %v2087_v58 = vpack.c.bf16 %v2052_v41, %v2049_v24 }
 0x7e4   : > { %3206 = vmatprep.mubr.msk.bf16.mxu0 %vm1592_vm4, %v2087_v58 }
 0x7e5   : > { %3207 = vmatmul.mubr.msk.bf16.gmra.mrb[100].mxu0 %vm1592_vm4, %v2088_v8 }
 0x7ec   : > { %v3192_v62 = vpop.f32.mrb[88].mxu0 }
 0x7ed   : > { %v2064_v30 = vpop.f32.mrb[89].mxu0  ;;  %v2073_v15 = vadd.f32 %v3192_v62, %v1951_v42 }
 0x7ee   : > { %v3193_v38 = vpop.f32.mrb[90].mxu0  ;;  %v2065_v26 = vadd.f32 %v2064_v30, %v1951_v42 }
 0x7ef   : > { %v2076_v6 = vadd.f32 %v3193_v38, %v1951_v42  ;;  %v2067_v59 = vpop.f32.mrb[91].mxu0 }
 0x7f0   : > { %v2068_v23 = vadd.f32 %v2067_v59, %v1951_v42 }
 0x7f1   : > { %v2090_v1 = vpack.c.bf16 %v2076_v6, %v2073_v15 }
 0x7f2   : > { %v2089_v2 = vpack.c.bf16 %v2068_v23, %v2065_v26 }
 0x7f4   : > { %3210 = vmatprep.mubr.msk.bf16.mxu0 %vm1592_vm4, %v2089_v2 }
 0x7f5   : > { %3211 = vmatmul.mubr.msk.bf16.gmra.mrb[104].mxu0 %vm1592_vm4, %v2090_v1 }
 0x898   : > { %v3200_v9 = vpop.f32.mrb[92].mxu0 }
 0x899   : > { %v2161_v4 = vpop.f32.mrb[93].mxu0 }
 0x89a   : > { %v3201_v12 = vpop.f32.mrb[94].mxu0 }
 0x89b   : > { %v2225_v22 = vpack.c.bf16 %v3201_v12, %v3200_v9  ;;  %v2164_v3 = vpop.f32.mrb[95].mxu0 }
 0x89c   : > { %v2224_v25 = vpack.c.bf16 %v2164_v3, %v2161_v4 }
 0x89e   : > { %3214 = vmatprep.subr.bf16.mxu1 %v2224_v25 }
 0x89f   : > { %3215 = vmatpush3.bf16.msra.mxu1 %v2224_v25 }
 0x8a0   : > { %3216 = vmatprep.subr.bf16.mxu1 %v2225_v22 }
 0x8a3   : > { %3217 = vmatpush3.bf16.msra.mxu1 %v2225_v22 }
 0x8a8   : > { %v3204_v27 = vpop.f32.mrb[96].mxu0 }
 0x8a9   : > { %v2177_v29 = vpop.f32.mrb[97].mxu0 }
 0x8aa   : > { %v3205_v32 = vpop.f32.mrb[98].mxu0 }
 0x8ab   : > { %v2227_v37 = vpack.c.bf16 %v3205_v32, %v3204_v27  ;;  %v2180_v45 = vpop.f32.mrb[99].mxu0 }
 0x8ac   : > { %v2226_v34 = vpack.c.bf16 %v2180_v45, %v2177_v29 }
 0x8ae   : > { %3218 = vmatprep.subr.bf16.mxu1 %v2226_v34 }
 0x8af   : > { %3219 = vmatpush3.bf16.msra.mxu1 %v2226_v34 }
 0x8b0   : > { %3220 = vmatprep.subr.bf16.mxu1 %v2227_v37 }
 0x8b3   : > { %3221 = vmatpush3.bf16.msra.mxu1 %v2227_v37 }
 0x8b8   : > { %v3208_v19 = vpop.f32.mrb[100].mxu0 }
 0x8b9   : > { %v2193_v40 = vpop.f32.mrb[101].mxu0 }
 0x8ba   : > { %v3209_v56 = vpop.f32.mrb[102].mxu0 }
 0x8bb   : > { %v2229_v42 = vpack.c.bf16 %v3209_v56, %v3208_v19  ;;  %v2196_v51 = vpop.f32.mrb[103].mxu0 }
 0x8bc   : > { %v2228_v60 = vpack.c.bf16 %v2196_v51, %v2193_v40 }
 0x8be   : > { %3222 = vmatprep.subr.bf16.mxu1 %v2228_v60 }
 0x8bf   : > { %3223 = vmatpush3.bf16.msra.mxu1 %v2228_v60 }
 0x8c0   : > { %3224 = vmatprep.subr.bf16.mxu1 %v2229_v42 }
 0x8c3   : > { %3225 = vmatpush3.bf16.msra.mxu1 %v2229_v42  ;;  %v2344_v42 = vsub.s32 7, %v3806_v44 }
 0x8c5   : > { %v4601_v51 = vrot.slane %v3814_v46, %v2344_v42 }
 0x8c8   : > { %v3212_v52 = vpop.f32.mrb[104].mxu0 }
 0x8c9   : > { %v2209_v10 = vpop.f32.mrb[105].mxu0 }
 0x8ca   : > { %v3213_v48 = vpop.f32.mrb[106].mxu0 }
 0x8cb   : > { %v2231_v53 = vpack.c.bf16 %v3213_v48, %v3212_v52  ;;  %v2212_v63 = vpop.f32.mrb[107].mxu0 }
 0x8cc   : > { %v2230_v55 = vpack.c.bf16 %v2212_v63, %v2209_v10 }
 0x8ce   : > { %3226 = vmatprep.subr.bf16.mxu1 %v2230_v55 }
 0x8cf   : > { %3227 = vmatpush3.bf16.msra.mxu1 %v2230_v55 }
 0x8d0   : > { %3228 = vmatprep.subr.bf16.mxu1 %v2231_v53 }
 0x8d3   : > { %3229 = vmatpush3.bf16.msra.mxu1 %v2231_v53 }
 0x8d6   : > { %3231 = vmatmul.mubr.bf16.vlgmr.msra.gmra.mrb[68].mxu1 %v3668_v16 }
 0x8d7   : > { %3234 = vmatprep.mubr.bf16.mxu1 %v3669_v57 }
 0x8de   : > { %3235 = vmatmul.mubr.bf16.gmra.mrb[72].mxu1 %v3670_v21 }
 0x8df   : > { %3238 = vmatprep.mubr.bf16.mxu1 %v3671_v36 }
 0x8e6   : > { %3239 = vmatmul.mubr.bf16.gmra.mrb[76].mxu1 %v3672_v33 }
 0x8e7   : > { %3242 = vmatprep.mubr.bf16.mxu1 %v3673_v20 }
 0x8ee   : > { %3243 = vmatmul.mubr.bf16.gmra.mrb[80].mxu1 %v3674_v61 }
 0x9a9   : > { %v3232_v11 = vpop.f32.mrb[68].mxu1 }
 0x9aa   : > { %v2270_v17 = vpop.f32.mrb[69].mxu1  ;;  %v2279_v31 = vadd.f32 %v3232_v11, %v2235_v14 }
 0x9ab   : > { %v3233_v28 = vpop.f32.mrb[70].mxu1  ;;  %v2271_v49 = vadd.f32 %v2270_v17, %v2235_v14 }
 0x9ac   : > { %v2282_v39 = vadd.f32 %v3233_v28, %v2235_v14  ;;  %v2273_v47 = vpop.f32.mrb[71].mxu1 }
 0x9ad   : > { %v2274_v13 = vadd.f32 %v2273_v47, %v2235_v14 }
 0x9ae   : > { %v2335_v54 = vpack.c.bf16 %v2282_v39, %v2279_v31 }
 0x9af   : > { %v2334_v24 = vpack.c.bf16 %v2274_v13, %v2271_v49 }
 0x9b1   : > { %v3236_v41 = vpop.f32.mrb[72].mxu1  ;;  %3248 = vmatprep.mubr.msk.bf16.mxu0 %vm2346_vm6, %v2334_v24 }
 0x9b2   : > { %v2286_v8 = vpop.f32.mrb[73].mxu1  ;;  %3249 = vmatmul.mubr.msk.bf16.vlgmr.msra.gmra.mrb[108].mxu0 %vm2346_vm6, %v2335_v54  ;;  %v2295_v62 = vadd.f32 %v3236_v41, %v2235_v14 }
 0x9b3   : > { %v3237_v58 = vpop.f32.mrb[74].mxu1  ;;  %v2287_v15 = vadd.f32 %v2286_v8, %v2235_v14 }
 0x9b4   : > { %v2298_v30 = vadd.f32 %v3237_v58, %v2235_v14  ;;  %v2289_v38 = vpop.f32.mrb[75].mxu1 }
 0x9b5   : > { %v2290_v6 = vadd.f32 %v2289_v38, %v2235_v14 }
 0x9b6   : > { %v2337_v59 = vpack.c.bf16 %v2298_v30, %v2295_v62 }
 0x9b7   : > { %v2336_v26 = vpack.c.bf16 %v2290_v6, %v2287_v15 }
 0x9b9   : > { %v3240_v23 = vpop.f32.mrb[76].mxu1  ;;  %3252 = vmatprep.mubr.msk.bf16.mxu0 %vm2346_vm6, %v2336_v26 }
 0x9ba   : > { %v2302_v1 = vpop.f32.mrb[77].mxu1  ;;  %3253 = vmatmul.mubr.msk.bf16.gmra.mrb[112].mxu0 %vm2346_vm6, %v2337_v59  ;;  %v2311_v43 = vadd.f32 %v3240_v23, %v2235_v14 }
 0x9bb   : > { %v3241_v2 = vpop.f32.mrb[78].mxu1  ;;  %v2303_v4 = vadd.f32 %v2302_v1, %v2235_v14 }
 0x9bc   : > { %v2314_v7 = vadd.f32 %v3241_v2, %v2235_v14  ;;  %v2305_v9 = vpop.f32.mrb[79].mxu1 }
 0x9bd   : > { %v2306_v12 = vadd.f32 %v2305_v9, %v2235_v14 }
 0x9be   : > { %v2339_v22 = vpack.c.bf16 %v2314_v7, %v2311_v43 }
 0x9bf   : > { %v2338_v3 = vpack.c.bf16 %v2306_v12, %v2303_v4 }
 0x9c1   : > { %v3244_v25 = vpop.f32.mrb[80].mxu1  ;;  %3256 = vmatprep.mubr.msk.bf16.mxu0 %vm2346_vm6, %v2338_v3 }
 0x9c2   : > { %v2318_v27 = vpop.f32.mrb[81].mxu1  ;;  %3257 = vmatmul.mubr.msk.bf16.gmra.mrb[116].mxu0 %vm2346_vm6, %v2339_v22  ;;  %v2327_v32 = vadd.f32 %v3244_v25, %v2235_v14  ;;  %v4682_v25 = vpop.permute.xlu0 %2712 }
 0x9c3   : > { %v3245_v29 = vpop.f32.mrb[82].mxu1  ;;  %v2319_v34 = vadd.f32 %v2318_v27, %v2235_v14  ;;  %v4689_v27 = vpop.permute.xlu1 %2714 }
 0x9c4   : > { %v2330_v37 = vadd.f32 %v3245_v29, %v2235_v14  ;;  %v2321_v45 = vpop.f32.mrb[83].mxu1 }
 0x9c5   : > { %v2322_v19 = vadd.f32 %v2321_v45, %v2235_v14 }
 0x9c6   : > { %v2341_v40 = vpack.c.bf16 %v2330_v37, %v2327_v32  ;;  %v4693_v29 = vpop.permute.xlu0 %2716 }
 0x9c7   : > { %v2340_v56 = vpack.c.bf16 %v2322_v19, %v2319_v34  ;;  %v4697_v32 = vpop.permute.xlu1 %2718 }
 0x9c9   : > { %3260 = vmatprep.mubr.msk.bf16.mxu0 %vm2346_vm6, %v2340_v56 }
 0x9ca   : > { %3261 = vmatmul.mubr.msk.bf16.gmra.mrb[120].mxu0 %vm2346_vm6, %v2341_v40  ;;  %v4699_v37 = vpop.permute.xlu0 %2720 }
 0x9ce   : > { %v4703_v45 = vpop.permute.xlu0 %2724 }
 0xa85   : > { %v3250_v60 = vpop.f32.mrb[108].mxu0 }
 0xa86   : > { %v4604_v52 = vadd.f32 %v3250_v60, %v4601_v51  ;;  %v2409_v10 = vpop.f32.mrb[109].mxu0 }
 0xa87   : > { %v3251_v48 = vpop.f32.mrb[110].mxu0  ;;  %v4608_v53 = vadd.f32 %v2409_v10, %v4601_v51 }
 0xa88   : > { %3555 = vtanh.f32 %v4604_v52  ;;  %v2412_v63 = vpop.f32.mrb[111].mxu0  ;;  %v4611_v55 = vadd.f32 %v3251_v48, %v4601_v51  ;;  %v3089_v60 = vmul.f32 -1.442695, %v4604_v52 }
 0xa89   : > { %3557 = vtanh.f32 %v4608_v53  ;;  %v4616_v44 = vadd.f32 %v2412_v63, %v4601_v51  ;;  %v3087_v48 = vmul.f32 -1.442695, %v4608_v53 }
 0xa8a   : > { %3559 = vtanh.f32 %v4611_v55  ;;  %v3090_v63 = vmul.f32 -1.442695, %v4611_v55 }
 0xa8d   : > { %v3254_v46 = vpop.f32.mrb[112].mxu0 }
 0xa8e   : > { %v4619_v16 = vadd.f32 %v3254_v46, %v4601_v51  ;;  %v2425_v57 = vpop.f32.mrb[113].mxu0 }
 0xa8f   : > { %v3255_v21 = vpop.f32.mrb[114].mxu0  ;;  %v4623_v36 = vadd.f32 %v2425_v57, %v4601_v51 }
 0xa90   : > { %3561 = vtanh.f32 %v4619_v16  ;;  %v2428_v33 = vpop.f32.mrb[115].mxu0  ;;  %v4627_v20 = vadd.f32 %v3255_v21, %v4601_v51  ;;  %v3093_v21 = vmul.f32 -1.442695, %v4619_v16 }
 0xa91   : > { %3563 = vtanh.f32 %v4616_v44  ;;  %v4633_v5 = vadd.f32 %v2428_v33, %v4601_v51  ;;  %v3088_v33 = vmul.f32 -1.442695, %v4616_v44  ;;  %v3091_v52 = vmul.f32 -1.442695, %v4623_v36 }
 0xa92   : > { %v3556_v61 = vpop.eup %3555  ;;  %3565 = vtanh.f32 %v4623_v36  ;;  %v3094_v53 = vmul.f32 -1.442695, %v4627_v20 }
 0xa93   : > { %2620 = vrot.lane.b32.xlu0 %v3556_v61, %s3691_s12  ;;  %3567 = vtanh.f32 %v4627_v20  ;;  %v3558_v11 = vpop.eup %3557 }
 0xa94   : > { %v3560_v31 = vpop.eup %3559 }
 0xa95   : > { %v3258_v14 = vpop.f32.mrb[116].mxu0  ;;  %2622 = vrot.lane.b32.xlu1 %v3560_v31, %s3691_s12 }
 0xa96   : > { %v4636_v17 = vadd.f32 %v3258_v14, %v4601_v51  ;;  %v2441_v28 = vpop.f32.mrb[117].mxu0 }
 0xa97   : > { %v3259_v39 = vpop.f32.mrb[118].mxu0  ;;  %2616 = vrot.lane.b32.xlu0 %v3558_v11, %s3691_s12  ;;  %v4642_v47 = vadd.f32 %v2441_v28, %v4601_v51  ;;  %v3092_v11 = vmul.f32 -1.442695, %v4633_v5 }
 0xa98   : > { %3569 = vtanh.f32 %v4636_v17  ;;  %v2444_v49 = vpop.f32.mrb[119].mxu0  ;;  %v4646_v13 = vadd.f32 %v3259_v39, %v4601_v51  ;;  %v3097_v28 = vmul.f32 -1.442695, %v4636_v17 }
 0xa99   : > { %3571 = vtanh.f32 %v4633_v5  ;;  %v4653_v41 = vadd.f32 %v2444_v49, %v4601_v51  ;;  %v3095_v36 = vmul.f32 -1.442695, %v4642_v47 }
 0xa9a   : > { %v3562_v54 = vpop.eup %3561  ;;  %3573 = vtanh.f32 %v4642_v47  ;;  %v3098_v20 = vmul.f32 -1.442695, %v4646_v13 }
 0xa9b   : > { %v3564_v24 = vpop.eup %3563  ;;  %2628 = vrot.lane.b32.xlu0 %v3562_v54, %s3691_s12  ;;  %3575 = vtanh.f32 %v4646_v13  ;;  %v3096_v17 = vmul.f32 -1.442695, %v4653_v41 }
 0xa9c   : > { %2618 = vrot.lane.b32.xlu1 %v3564_v24, %s3691_s12  ;;  %v3566_v58 = vpop.eup %3565 }
 0xa9d   : > { %v3262_v8 = vpop.f32.mrb[120].mxu0  ;;  %v3568_v38 = vpop.eup %3567 }
 0xa9e   : > { %v4656_v62 = vadd.f32 %v3262_v8, %v4601_v51  ;;  %v2457_v30 = vpop.f32.mrb[121].mxu0 }
 0xa9f   : > { %v3263_v15 = vpop.f32.mrb[122].mxu0  ;;  %2624 = vrot.lane.b32.xlu0 %v3566_v58, %s3691_s12  ;;  %v4662_v6 = vadd.f32 %v2457_v30, %v4601_v51 }
 0xaa0   : > { %3577 = vtanh.f32 %v4656_v62  ;;  %2630 = vrot.lane.b32.xlu1 %v3568_v38, %s3691_s12  ;;  %v2460_v59 = vpop.f32.mrb[123].mxu0  ;;  %v4666_v26 = vadd.f32 %v3263_v15, %v4601_v51  ;;  %v3101_v30 = vmul.f32 -1.442695, %v4656_v62 }
 0xaa1   : > { %3579 = vtanh.f32 %v4653_v41  ;;  %v4673_v2 = vadd.f32 %v2460_v59, %v4601_v51 }
 0xaa2   : > { %v3570_v23 = vpop.eup %3569  ;;  %3581 = vtanh.f32 %v4662_v6 }
 0xaa3   : > { %v3572_v1 = vpop.eup %3571  ;;  %2636 = vrot.lane.b32.xlu0 %v3570_v23, %s3691_s12  ;;  %3583 = vtanh.f32 %v4666_v26  ;;  %v3099_v23 = vmul.f32 -1.442695, %v4662_v6 }
 0xaa4   : > { %2626 = vrot.lane.b32.xlu1 %v3572_v1, %s3691_s12  ;;  %v3574_v43 = vpop.eup %3573  ;;  %3585 = vtanh.f32 %v4673_v2  ;;  %v3102_v1 = vmul.f32 -1.442695, %v4666_v26 }
 0xaa5   : > { %v3576_v7 = vpop.eup %3575  ;;  %3587 = vpow2.f32 %v3089_v60 }
 0xaa6   : > { %3589 = vpow2.f32 %v3087_v48 }
 0xaa7   : > { %2632 = vrot.lane.b32.xlu0 %v3574_v43, %s3691_s12  ;;  %3591 = vpow2.f32 %v3090_v63 }
 0xaa8   : > { %2638 = vrot.lane.b32.xlu1 %v3576_v7, %s3691_s12  ;;  %3593 = vpow2.f32 %v3093_v21 }
 0xaa9   : > { %3595 = vpow2.f32 %v3088_v33 }
 0xaaa   : > { %v3578_v9 = vpop.eup %3577  ;;  %3597 = vpow2.f32 %v3091_v52 }
 0xaab   : > { %v3580_v4 = vpop.eup %3579  ;;  %2644 = vrot.lane.b32.xlu0 %v3578_v9, %s3691_s12  ;;  %3599 = vpow2.f32 %v3094_v53 }
 0xaac   : > { %2634 = vrot.lane.b32.xlu1 %v3580_v4, %s3691_s12  ;;  %v3582_v12 = vpop.eup %3581  ;;  %3601 = vpow2.f32 %v3092_v11 }
 0xaad   : > { %v3584_v22 = vpop.eup %3583  ;;  %3603 = vpow2.f32 %v3097_v28 }
 0xaae   : > { %v3586_v3 = vpop.eup %3585 }
 0xaaf   : > { %2640 = vrot.lane.b32.xlu0 %v3582_v12, %s3691_s12  ;;  %v3588_v55 = vpop.eup %3587 }
 0xab0   : > { %2646 = vrot.lane.b32.xlu1 %v3584_v22, %s3691_s12  ;;  %v2522_v16 = vadd.f32 1.0, %v3588_v55  ;;  %v3590_v31 = vpop.eup %3589  ;;  %v3100_v22 = vmul.f32 -1.442695, %v4673_v2 }
 0xab1   : > { %v3592_v39 = vpop.eup %3591  ;;  %v2520_v54 = vadd.f32 1.0, %v3590_v31 }
 0xab2   : > { %3605 = vrcp.f32 %v2522_v16  ;;  %v3594_v5 = vpop.eup %3593  ;;  %v2523_v24 = vadd.f32 1.0, %v3592_v39 }
 0xab3   : > { %2800 = vrot.lane.b32.xlu0 %v4434_v18, %s3690_s17  ;;  %v4701_v18 = vpop.permute.xlu1 %2722  ;;  %v3596_v8 = vpop.eup %3595  ;;  %3607 = vpow2.f32 %v3095_v36  ;;  %v2526_v47 = vadd.f32 1.0, %v3594_v5 }
 0xab4   : > { %2642 = vrot.lane.b32.xlu1 %v3586_v3, %s3691_s12  ;;  %3609 = vpow2.f32 %v3098_v20  ;;  %v3598_v15 = vpop.eup %3597  ;;  %v2521_v13 = vadd.f32 1.0, %v3596_v8 }
 0xab5   : > { %3611 = vrcp.f32 %v2520_v54  ;;  %v3600_v59 = vpop.eup %3599  ;;  %v2524_v43 = vadd.f32 1.0, %v3598_v15 }
 0xab6   : > { %3613 = vrcp.f32 %v2523_v24  ;;  %v3602_v41 = vpop.eup %3601  ;;  %v2527_v62 = vadd.f32 1.0, %v3600_v59 }
 0xab7   : > { %2804 = vrot.lane.b32.xlu0 %v4448_v35, %s3690_s17  ;;  %v4705_v34 = vpop.permute.xlu1 %2726  ;;  %v4707_v35 = vpop.permute.xlu0 %2728  ;;  %3615 = vpow2.f32 %v3096_v17  ;;  %v2525_v48 = vadd.f32 1.0, %v3602_v41 }
 0xab8   : > { %2802 = vrot.lane.b32.xlu1 %v4441_v50, %s3690_s17  ;;  %3617 = vpow2.f32 %v3101_v30  ;;  %v3604_v7 = vpop.eup %3603 }
 0xab9   : > { %3619 = vrcp.f32 %v2526_v47  ;;  %v2530_v6 = vadd.f32 1.0, %v3604_v7 }
 0xaba   : > { %3621 = vrcp.f32 %v2521_v13 }
 0xabb   : > { %v4709_v19 = vpop.permute.xlu1 %2730  ;;  %v4711_v50 = vpop.permute.xlu0 %2732  ;;  %3623 = vpow2.f32 %v3099_v23 }
 0xabc   : > { %2806 = vrot.lane.b32.xlu1 %v4455_v0, %s3690_s17  ;;  %v3606_v4 = vpop.eup %3605  ;;  %3625 = vpow2.f32 %v3102_v1 }
 0xabd   : > { %v3608_v3 = vpop.eup %3607  ;;  %3627 = vrcp.f32 %v2524_v43  ;;  %v2570_v26 = vsub.f32 1.0, %v3606_v4 }
 0xabe   : > { %v3610_v60 = vpop.eup %3609  ;;  %3629 = vrcp.f32 %v2527_v62  ;;  %v2528_v2 = vadd.f32 1.0, %v3608_v3 }
 0xabf   : > { %v4713_v40 = vpop.permute.xlu1 %2734  ;;  %v4715_v56 = vpop.permute.xlu0 %2736  ;;  %3631 = vpow2.f32 %v3100_v22  ;;  %v2531_v31 = vadd.f32 1.0, %v3610_v60 }
 0xac0   : > { %v3612_v63 = vpop.eup %3611  ;;  %3633 = vrcp.f32 %v2530_v6 }
 0xac1   : > { %v3614_v33 = vpop.eup %3613  ;;  %v2568_v16 = vsub.f32 1.0, %v3612_v63  ;;  %3635 = vrcp.f32 %v2525_v48 }
 0xac2   : > { %v3616_v55 = vpop.eup %3615  ;;  %v2571_v36 = vsub.f32 1.0, %v3614_v33  ;;  %3637 = vrcp.f32 %v2528_v2 }
 0xac3   : > { %v4717_v0 = vpop.permute.xlu1 %2738  ;;  %v4719_v42 = vpop.permute.xlu0 %2740  ;;  %v2529_v15 = vadd.f32 1.0, %v3616_v55  ;;  %3639 = vrcp.f32 %v2531_v31 }
 0xac4   : > { %v3618_v11 = vpop.eup %3617 }
 0xac5   : > { %v3620_v39 = vpop.eup %3619  ;;  %v2534_v3 = vadd.f32 1.0, %v3618_v11  ;;  %3641 = vrcp.f32 %v2529_v15 }
 0xac6   : > { %v3622_v54 = vpop.eup %3621  ;;  %v2574_v1 = vsub.f32 1.0, %v3620_v39 }
 0xac7   : > { %v4721_v51 = vpop.permute.xlu1 %2742  ;;  %v4724_v10 = vpop.permute.xlu0 %2776  ;;  %v2569_v7 = vsub.f32 1.0, %v3622_v54  ;;  %3643 = vrcp.f32 %v2534_v3 }
 0xac8   : > { %v3624_v17 = vpop.eup %3623 }
 0xac9   : > { %v3626_v13 = vpop.eup %3625  ;;  %v2532_v6 = vadd.f32 1.0, %v3624_v17 }
 0xaca   : > { %v3628_v41 = vpop.eup %3627 }
 0xacb   : > { %v4728_v46 = vpop.permute.xlu1 %2778  ;;  %v4730_v57 = vpop.permute.xlu0 %2780  ;;  %3645 = vrcp.f32 %v2532_v6 }
 0xacc   : > { %v3630_v62 = vpop.eup %3629 }
 0xacd   : > { %v3632_v60 = vpop.eup %3631 }
 0xace   : > { %v3634_v55 = vpop.eup %3633 }
 0xacf   : > { %v4734_v61 = vpop.permute.xlu1 %2782  ;;  %v4737_v14 = vpop.permute.xlu0 %2784 }
 0xad0   : > { %v3636_v31 = vpop.eup %3635 }
 0xad3   : > { %v4742_v44 = vpop.permute.xlu1 %2786  ;;  %v4744_v49 = vpop.permute.xlu0 %2788 }
 0xad7   : > { %v4749_v58 = vpop.permute.xlu1 %2790  ;;  %v4752_v38 = vpop.permute.xlu0 %2792 }
 0xadb   : > { %v4756_v9 = vpop.permute.xlu1 %2794  ;;  %v4758_v12 = vpop.permute.xlu0 %2796 }
 0xadf   : > { %v4761_v52 = vpop.permute.xlu1 %2798 }
 0xb05   : > { %v2621_v21 = vpop.permute.xlu0 %2620 }
 0xb06   : > { %v2666_v53 = vmul.f32 %v2621_v21, %v2570_v26 }
 0xb07   : > { %v2623_v24 = vpop.permute.xlu1 %2622 }
 0xb08   : > { %v2682_v28 = vmax.f32 %v2666_v53, 0.0  ;;  %v2667_v47 = vmul.f32 %v2623_v24, %v2571_v36  ;;  %v2572_v53 = vsub.f32 1.0, %v3628_v41  ;;  %v2533_v36 = vadd.f32 1.0, %v3632_v60 }
 0xb09   : > { %v2617_v20 = vpop.permute.xlu0 %2616 }
 0xb0a   : > { %v2827_v5 = vsel %vm2824_vm7, %v2682_v28, %v4693_v29  ;;  %v2664_v8 = vmul.f32 %v2617_v20, %v2568_v16  ;;  %v2683_v43 = vmax.f32 %v2667_v47, 0.0  ;;  %v2575_v28 = vsub.f32 1.0, %v3630_v62 }
 0xb0b   : > { %v2844_v30 = vsel %vm2841_vm8, %v2827_v5, %v4730_v57  ;;  %v2535_v16 = vadd.f32 1.0, %v3626_v13  ;;  %v2573_v13 = vsub.f32 1.0, %v3636_v31 }
 0xb0c   : > { %v2861_v59 = vsel %vm2858_vm9, %v2844_v30, 0.0  ;;  %v2680_v23 = vmax.f32 %v2664_v8, 0.0  ;;  %v2828_v26 = vsel %vm2824_vm7, %v2683_v43, %v4697_v32  ;;  %v3638_v30 = vpop.eup %3637 }
 0xb0d   : > { %2877 = vst [vmem:[%s4768_s16 + $0x10] sm:$0xff] %v2861_v59  ;;  %v2629_v29 = vpop.permute.xlu0 %2628  ;;  %v2845_v21 = vsel %vm2841_vm8, %v2828_v26, %v4734_v61  ;;  %3647 = vrcp.f32 %v2535_v16 }
 0xb0e   : > { %v2825_v4 = vsel %vm2824_vm7, %v2680_v23, %v4682_v25  ;;  %v2619_v57 = vpop.permute.xlu1 %2618  ;;  %v2670_v22 = vmul.f32 %v2629_v29, %v2574_v1  ;;  %v2862_v2 = vsel %vm2858_vm9, %v2845_v21, 0.0  ;;  %3649 = vrcp.f32 %v2533_v36 }
 0xb0f   : > { %v2842_v48 = vsel %vm2841_vm8, %v2825_v4, %v4724_v10  ;;  %v2665_v63 = vmul.f32 %v2619_v57, %v2569_v7  ;;  %2878 = vst [vmem:[%s4768_s16 + $0x18] sm:$0xff] %v2862_v2  ;;  %v2576_v4 = vsub.f32 1.0, %v3638_v30 }
 0xb10   : > { %v2859_v25 = vsel %vm2858_vm9, %v2842_v48, 0.0  ;;  %v2686_v33 = vmax.f32 %v2670_v22, 0.0 }
 0xb11   : > { %2875 = vst [vmem:[%s4768_s16] sm:$0xff] %v2859_v25  ;;  %v2681_v11 = vmax.f32 %v2665_v63, 0.0  ;;  %v2625_v32 = vpop.permute.xlu0 %2624 }
 0xb12   : > { %v2831_v10 = vsel %vm2824_vm7, %v2686_v33, %v4703_v45  ;;  %v2631_v39 = vpop.permute.xlu1 %2630  ;;  %v2668_v61 = vmul.f32 %v2625_v32, %v2572_v53  ;;  %v2578_v45 = vsub.f32 1.0, %v3634_v55 }
 0xb13   : > { %v2826_v20 = vsel %vm2824_vm7, %v2681_v11, %v4689_v27  ;;  %v2848_v54 = vsel %vm2841_vm8, %v2831_v10, %v4744_v49  ;;  %v2671_v5 = vmul.f32 %v2631_v39, %v2575_v28  ;;  %v3640_v27 = vpop.eup %3639 }
 0xb14   : > { %v2843_v24 = vsel %vm2841_vm8, %v2826_v20, %v4728_v46  ;;  %v2865_v8 = vsel %vm2858_vm9, %v2848_v54, 0.0  ;;  %v2684_v17 = vmax.f32 %v2668_v61, 0.0  ;;  %v2579_v3 = vsub.f32 1.0, %v3640_v27 }
 0xb15   : > { %v2860_v47 = vsel %vm2858_vm9, %v2843_v24, 0.0  ;;  %2881 = vst [vmem:[%s4768_s16 + $0x30] sm:$0xff] %v2865_v8  ;;  %v2687_v15 = vmax.f32 %v2671_v5, 0.0  ;;  %v2637_v59 = vpop.permute.xlu0 %2636 }
 0xb16   : > { %2876 = vst [vmem:[%s4768_s16 + $0x8] sm:$0xff] %v2860_v47  ;;  %v2829_v49 = vsel %vm2824_vm7, %v2684_v17, %v4699_v37  ;;  %v2627_v23 = vpop.permute.xlu1 %2626  ;;  %v2674_v1 = vmul.f32 %v2637_v59, %v2578_v45  ;;  %v3642_v37 = vpop.eup %3641 }
 0xb17   : > { %v2832_v46 = vsel %vm2824_vm7, %v2687_v15, %v4705_v34  ;;  %v2846_v41 = vsel %vm2841_vm8, %v2829_v49, %v4737_v14  ;;  %v2669_v43 = vmul.f32 %v2627_v23, %v2573_v13  ;;  %v3644_v63 = vpop.eup %3643  ;;  %v2577_v2 = vsub.f32 1.0, %v3642_v37 }
 0xb18   : > { %v2849_v7 = vsel %vm2841_vm8, %v2832_v46, %v4749_v58  ;;  %v2863_v29 = vsel %vm2858_vm9, %v2846_v41, 0.0  ;;  %v2690_v62 = vmax.f32 %v2674_v1, 0.0  ;;  %v3646_v53 = vpop.eup %3645  ;;  %v2582_v16 = vsub.f32 1.0, %v3644_v63 }
 0xb19   : > { %v2866_v57 = vsel %vm2858_vm9, %v2849_v7, 0.0  ;;  %2879 = vst [vmem:[%s4768_s16 + $0x20] sm:$0xff] %v2863_v29  ;;  %v2685_v22 = vmax.f32 %v2669_v43, 0.0  ;;  %v2633_v34 = vpop.permute.xlu0 %2632  ;;  %v3648_v31 = vpop.eup %3647  ;;  %v2580_v61 = vsub.f32 1.0, %v3646_v53 }
 0xb1a   : > { %2882 = vst [vmem:[%s4768_s16 + $0x38] sm:$0xff] %v2866_v57  ;;  %v2835_v14 = vsel %vm2824_vm7, %v2690_v62, %v4711_v50  ;;  %v2639_v6 = vpop.permute.xlu1 %2638  ;;  %v2672_v60 = vmul.f32 %v2633_v34, %v2576_v4  ;;  %v3650_v36 = vpop.eup %3649  ;;  %v2583_v8 = vsub.f32 1.0, %v3648_v31 }
 0xb1b   : > { %v2830_v58 = vsel %vm2824_vm7, %v2685_v22, %v4701_v18  ;;  %v2852_v26 = vsel %vm2841_vm8, %v2835_v14, %v4758_v12  ;;  %v2675_v48 = vmul.f32 %v2639_v6, %v2579_v3  ;;  %v2581_v47 = vsub.f32 1.0, %v3650_v36 }
 0xb1c   : > { %v2847_v21 = vsel %vm2841_vm8, %v2830_v58, %v4742_v44  ;;  %v2869_v25 = vsel %vm2858_vm9, %v2852_v26, 0.0  ;;  %v2688_v33 = vmax.f32 %v2672_v60, 0.0 }
 0xb1d   : > { %v2864_v50 = vsel %vm2858_vm9, %v2847_v21, 0.0  ;;  %2885 = vst [vmem:[%s4768_s16 + $0x50] sm:$0xff] %v2869_v25  ;;  %v2691_v55 = vmax.f32 %v2675_v48, 0.0  ;;  %v2645_v11 = vpop.permute.xlu0 %2644 }
 0xb1e   : > { %2880 = vst [vmem:[%s4768_s16 + $0x28] sm:$0xff] %v2864_v50  ;;  %v2833_v18 = vsel %vm2824_vm7, %v2688_v33, %v4707_v35  ;;  %v2635_v12 = vpop.permute.xlu1 %2634  ;;  %v2678_v54 = vmul.f32 %v2645_v11, %v2582_v16 }
 0xb1f   : > { %v2836_v44 = vsel %vm2824_vm7, %v2691_v55, %v4713_v40  ;;  %v2850_v28 = vsel %vm2841_vm8, %v2833_v18, %v4752_v38  ;;  %v2673_v32 = vmul.f32 %v2635_v12, %v2577_v2 }
 0xb20   : > { %v2853_v10 = vsel %vm2841_vm8, %v2836_v44, %v4761_v52  ;;  %v2867_v39 = vsel %vm2858_vm9, %v2850_v28, 0.0  ;;  %v2694_v30 = vmax.f32 %v2678_v54, 0.0 }
 0xb21   : > { %v2870_v35 = vsel %vm2858_vm9, %v2853_v10, 0.0  ;;  %2883 = vst [vmem:[%s4768_s16 + $0x40] sm:$0xff] %v2867_v39  ;;  %v2689_v20 = vmax.f32 %v2673_v32, 0.0  ;;  %v2641_v40 = vpop.permute.xlu0 %2640 }
 0xb22   : > { %2886 = vst [vmem:[%s4768_s16 + $0x58] sm:$0xff] %v2870_v35  ;;  %v2647_v5 = vpop.permute.xlu1 %2646  ;;  %v2676_v38 = vmul.f32 %v2641_v40, %v2580_v61  ;;  %v2839_v1 = vsel %vm2824_vm7, %v2694_v30, %v4719_v42 }
 0xb23   : > { %v2834_v24 = vsel %vm2824_vm7, %v2689_v20, %v4709_v19  ;;  %v2679_v13 = vmul.f32 %v2647_v5, %v2583_v8 }
 0xb24   : > { %v2851_v52 = vsel %vm2841_vm8, %v2834_v24, %v4756_v9  ;;  %v2692_v17 = vmax.f32 %v2676_v38, 0.0 }
 0xb25   : > { %v2868_v45 = vsel %vm2858_vm9, %v2851_v52, 0.0  ;;  %v2801_v15 = vpop.permute.xlu0 %2800  ;;  %v2695_v41 = vmax.f32 %v2679_v13, 0.0 }
 0xb26   : > { %2884 = vst [vmem:[%s4768_s16 + $0x48] sm:$0xff] %v2868_v45  ;;  %v2643_v59 = vpop.permute.xlu1 %2642  ;;  %v2837_v27 = vsel %vm2824_vm7, %v2692_v17, %v4715_v56 }
 0xb27   : > { %v2677_v19 = vmul.f32 %v2643_v59, %v2581_v47  ;;  %v2854_v49 = vsel %vm2841_vm8, %v2837_v27, %v2801_v15  ;;  %v2840_v37 = vsel %vm2824_vm7, %v2695_v41, %v4721_v51 }
 0xb28   : > { %v2871_v9 = vsel %vm2858_vm9, %v2854_v49, 0.0 }
 0xb29   : > { %v2693_v23 = vmax.f32 %v2677_v19, 0.0  ;;  %2887 = vst [vmem:[%s4768_s16 + $0x60] sm:$0xff] %v2871_v9  ;;  %v2805_v46 = vpop.permute.xlu0 %2804 }
 0xb2a   : > { %v2803_v43 = vpop.permute.xlu1 %2802  ;;  %v2856_v7 = vsel %vm2841_vm8, %v2839_v1, %v2805_v46 }
 0xb2b   : > { %v2838_v56 = vsel %vm2824_vm7, %v2693_v23, %v4717_v0  ;;  %v2873_v29 = vsel %vm2858_vm9, %v2856_v7, 0.0 }
 0xb2c   : > { %v2855_v62 = vsel %vm2841_vm8, %v2838_v56, %v2803_v43  ;;  %2889 = vst [vmem:[%s4768_s16 + $0x70] sm:$0xff] %v2873_v29 }
 0xb2d   : > { %v2872_v4 = vsel %vm2858_vm9, %v2855_v62, 0.0 }
 0xb2e   : > { %2888 = vst [vmem:[%s4768_s16 + $0x68] sm:$0xff] %v2872_v4  ;;  %v2807_v42 = vpop.permute.xlu1 %2806 }
 0xb2f   : > { %v2857_v57 = vsel %vm2841_vm8, %v2840_v37, %v2807_v42 }
 0xb30   : > { %v2874_v22 = vsel %vm2858_vm9, %v2857_v57, 0.0 }
 0xb31   : > { %2890 = vst [vmem:[%s4768_s16 + $0x78] sm:$0xff] %v2874_v22 }
 0xb32 PF: > { %s12_s9 = sadd.s32 1, %s3681_s9  }
 0xb33   : > { %p9_p4 = scmp.ge.s32.totalorder %s12_s9, 4  }
 0xb35   :  { %11 = sbr.rel (!%p9_p4) target bundleno = 1 (0x1), region = 58 }

</bundles_post_ra>
